<compile_context>
chip_gen: v6e
topology: v6e:2x2x1
jax: 0.10.0
libtpu: 0.0.40
codegen_flags: <defaults>
</compile_context>

<pallas_src>
import functools

import numpy as np
import jax
import jax.numpy as jnp
from jax import lax
from jax.experimental import pallas as pl
from jax.experimental.pallas import tpu as pltpu


# ----------------------------------------------------------------------------
# Helpers
# ----------------------------------------------------------------------------
def _ones_row_matmul(ones_row, x):
    """Axis-0 (batch) reduction on the MXU: ones(1, B) @ x -> (1, D)."""
    return lax.dot_general(ones_row, x,
                           dimension_numbers=(((1,), (0,)), ((), ())),
                           preferred_element_type=jnp.float32)


def _derive_vmem_limit_bytes(io_bytes):
    """Size the scoped-VMEM request from the real footprint, capped per chip."""
    limit = int(io_bytes) * 8 + (8 << 20)          # intermediates + headroom
    try:
        cap = int(pltpu.get_tpu_info().vmem_capacity_bytes) - (16 << 20)
    except Exception:                              # pragma: no cover - CPU / old jax
        cap = 48 << 20                             # safe on every generation (<= v7x 64 MiB)
    return int(max(16 << 20, min(limit, cap)))


# ----------------------------------------------------------------------------
# Fused kernel: DINO loss + center EMA update + Barlow-Twins loss
# ----------------------------------------------------------------------------
def dino_twins_kernel(inv_temps_ref, student_ref, teacher_ref, center_ref,
                      barlow_ref, dino_ref, bt_ref, new_center_ref, *,
                      n_crops, n_global_crops, center_momentum, lmbda,
                      bt_beta, bt_true_dim):
    # ------------------------- DINO cross-entropy ---------------------------
    inv_student_temp = inv_temps_ref[0]
    inv_teacher_temp = inv_temps_ref[1]

    s_all = student_ref[...].astype(jnp.float32) * inv_student_temp   # (n_crops*B, D)
    t_raw = teacher_ref[...].astype(jnp.float32)                      # (ng*B, D)
    center = center_ref[...]                                          # (1, D)

    # teacher: softmax((t - center) / teacher_temp) with normalization DEFERRED;
    # we keep the unnormalized exp and rescale the (b,1) row sums below.
    t_cent = (t_raw - center) * inv_teacher_temp
    t_max = jnp.max(t_cent, axis=-1, keepdims=True)
    t_exp = jnp.exp(t_cent - t_max)
    # exact reciprocal: approx=True (~2^-12 rel err) would risk the 1e-4 tolerance.
    t_inv_sum = pl.reciprocal(jnp.sum(t_exp, axis=-1, keepdims=True),
                              approx=False)                           # (ng*B, 1)

    # student: log_softmax(s / student_temp)
    s_max = jnp.max(s_all, axis=-1, keepdims=True)
    s_shift = s_all - s_max
    s_lse = jnp.log(jnp.sum(jnp.exp(s_shift), axis=-1, keepdims=True))
    s_logp = s_shift - s_lse

    b = s_all.shape[0] // n_crops          # batch per crop (asserted in wrapper)

    # NOTE: the linearity trick assumes the first n_global_crops student chunks correspond
    # 1:1 in order with the teacher global crops (standard DINO crop layout).
    s_chunks = [s_logp[i * b:(i + 1) * b, :] for i in range(n_crops)]
    s_sum = s_chunks[0]
    for i in range(1, n_crops):
        s_sum = s_sum + s_chunks[i]

    count = n_global_crops * (n_crops - 1)
    rows_acc = jnp.zeros((b, 1), jnp.float32)
    for t_idx in range(n_global_crops):
        t_chunk = t_exp[t_idx * b:(t_idx + 1) * b, :]
        inv_chunk = t_inv_sum[t_idx * b:(t_idx + 1) * b, :]
        # sum_{s != t} sum(-softmax(t) * log_softmax(s)) == inv_sum * sum(t_exp*(s_t - s_sum))
        row = jnp.sum(t_chunk * (s_chunks[t_idx] - s_sum), axis=-1, keepdims=True)
        rows_acc = rows_acc + inv_chunk * row
    dino_ref[0, 0] = jnp.sum(rows_acc) / (b * count)

    # center EMA on the *raw* (uncentered) teacher output; batch mean via MXU ones-row.
    n_t = t_raw.shape[0]
    ones_t = jnp.ones((1, n_t), jnp.float32)
    batch_center = _ones_row_matmul(ones_t, t_raw) / n_t
    new_center_ref[...] = (center * center_momentum
                           + batch_center * (1.0 - center_momentum))

    # ------------------- Barlow-Twins cross-correlation ---------------------
    z = barlow_ref[...].astype(jnp.float32)        # (n_crops*bb, d_pad), lanes zero-padded
    bb = z.shape[0] // n_crops
    d_pad = z.shape[1]
    ones_b = jnp.ones((1, bb), jnp.float32)

    # Standardize each crop chunk over the batch dim (unbiased, ddof=1), folding the 1/b
    # cross-correlation normalization into the features.  Batch reductions go to the MXU.
    # Padded / zero-variance columns are forced to exactly zero (guard vs rsqrt(0)=inf).
    zn = []
    for i in range(n_crops):
        zi = z[i * bb:(i + 1) * bb, :]
        mean = _ones_row_matmul(ones_b, zi) / bb
        zc = zi - mean
        var = _ones_row_matmul(ones_b, zc * zc) / (bb - 1)
        inv_std = jnp.where(var > 0.0, lax.rsqrt(var * bb), 0.0)
        zn.append(zc * inv_std)                    # includes 1/sqrt(b)

    # One lane-aligned slab of all standardized crops (d_pad is a multiple of 128).
    z_cat = jnp.concatenate(zn, axis=1)            # (bb, n_crops*d_pad)

    total_sq = jnp.zeros((), jnp.float32)
    diag_c = jnp.zeros((), jnp.float32)
    diag_c2 = jnp.zeros((), jnp.float32)
    for i in range(n_crops - 1):
        # Batched matmul for all pairs (i, j>i): contraction on dim 0, no transpose.
        rest = z_cat[:, (i + 1) * d_pad:]
        c = lax.dot_general(zn[i], rest,
                            dimension_numbers=(((0,), (0,)), ((), ())),
                            preferred_element_type=jnp.float32)   # (d_pad, (n-1-i)*d_pad)
        total_sq = total_sq + jnp.sum(c * c)
        # diag(c_ij)[k] = sum_batch zn_i[:,k]*zn_j[:,k]  -- no D x D mask needed.
        for j in range(i + 1, n_crops):
            diag_vec = _ones_row_matmul(ones_b, zn[i] * zn[j])    # (1, d_pad)
            diag_c = diag_c + jnp.sum(diag_vec)
            diag_c2 = diag_c2 + jnp.sum(diag_vec * diag_vec)

    n_pairs = n_crops * (n_crops - 1) // 2
    on_diag = diag_c2 - 2.0 * diag_c + n_pairs * bt_true_dim       # true (unpadded) dim
    off_diag = total_sq - diag_c2
    # c_{ji} = c_{ij}^T and both sums are transpose-invariant -> factor 2 over i<j.
    bt_ref[0, 0] = (2.0 * bt_beta * (on_diag + lmbda * off_diag)
                    / (n_crops * (n_crops - 1)))


# ----------------------------------------------------------------------------
# Python wrapper mirroring the PyTorch module
# ----------------------------------------------------------------------------
class DinowTwinsLoss:
    def __init__(self, *, n_crops, n_global_crops, out_channels,
                 center_momentum=0.9, student_temp=0.1, teacher_temp=0.07,
                 warmup_teacher_temp=0.04, warmup_teacher_temp_epochs=5,
                 max_epochs=10, lmbda=0.005, bt_beta=1.0):
        self.n_crops = n_crops
        self.n_global_crops = n_global_crops
        self.center_momentum = float(center_momentum)
        self.student_temp = float(student_temp)
        self.lmbda = float(lmbda)
        self.bt_beta = float(bt_beta)
        self.center = jnp.zeros((1, out_channels), jnp.float32)
        self.teacher_temp_schedule = np.concatenate((
            np.linspace(warmup_teacher_temp, teacher_temp,
                        warmup_teacher_temp_epochs),
            np.ones(max_epochs - warmup_teacher_temp_epochs) * teacher_temp,
        ))

    def __call__(self, student_out, teacher_out, barlow_out, epoch):
        d = teacher_out.shape[1]
        n_crops, ng = self.n_crops, self.n_global_crops

        assert student_out.shape[0] % n_crops == 0
        assert teacher_out.shape[0] % ng == 0
        assert barlow_out.shape[0] % n_crops == 0
        assert student_out.shape[0] // n_crops == teacher_out.shape[0] // ng, (
            "student and teacher must have the same batch-per-crop")
        b = student_out.shape[0] // n_crops
        bb = barlow_out.shape[0] // n_crops
        assert bb > 1, "unbiased std (ddof=1) requires batch-per-crop > 1"
        assert b % 8 == 0 and bb % 8 == 0, (
            "batch-per-crop must be a multiple of 8 (sublane-aligned chunk slices)")

        # Lane-dense Barlow features: zero-pad the feature dim to a multiple of 128.
        d_bt = barlow_out.shape[1]
        d_bt_pad = ((d_bt + 127) // 128) * 128
        if d_bt_pad != d_bt:
            barlow_in = jnp.pad(barlow_out, ((0, 0), (0, d_bt_pad - d_bt)))
        else:
            barlow_in = barlow_out

        teacher_temp = float(self.teacher_temp_schedule[int(epoch)])
        inv_temps = jnp.array([1.0 / self.student_temp, 1.0 / teacher_temp],
                              jnp.float32)

        kernel = functools.partial(
            dino_twins_kernel,
            n_crops=n_crops, n_global_crops=ng,
            center_momentum=self.center_momentum,
            lmbda=self.lmbda, bt_beta=self.bt_beta, bt_true_dim=d_bt)

        # --- footprint / cost bookkeeping ------------------------------------
        elem = 4  # f32 compute
        io_bytes = elem * (student_out.size + teacher_out.size
                           + barlow_in.size + 2 * d + 4)
        n_pairs = n_crops * (n_crops - 1) // 2
        flops = (2 * bb * d_bt_pad * d_bt_pad * n_pairs            # BT cross-corr matmuls
                 + 2 * bb * d_bt_pad * (n_pairs + 2 * n_crops)     # diag/mean/var ones-row mm
                 + 2 * teacher_out.shape[0] * d                    # center batch mean
                 + 10 * (student_out.size + teacher_out.size + barlow_in.size))
        transcendentals = student_out.size + teacher_out.size + student_out.shape[0]
        cost = pl.CostEstimate(flops=int(flops),
                               transcendentals=int(transcendentals),
                               bytes_accessed=int(io_bytes))

        dino_loss, bt_loss, new_center = pl.pallas_call(
            kernel,
            out_shape=(jax.ShapeDtypeStruct((1, 1), jnp.float32),   # dino
                       jax.ShapeDtypeStruct((1, 1), jnp.float32),   # barlow
                       jax.ShapeDtypeStruct((1, d), jnp.float32)),  # new center
            in_specs=[
                pl.BlockSpec(memory_space=pltpu.MemorySpace.SMEM),  # inv temps
                pl.BlockSpec(memory_space=pltpu.MemorySpace.VMEM),  # student
                pl.BlockSpec(memory_space=pltpu.MemorySpace.VMEM),  # teacher
                pl.BlockSpec(memory_space=pltpu.MemorySpace.VMEM),  # center
                pl.BlockSpec(memory_space=pltpu.MemorySpace.VMEM),  # barlow (padded)
            ],
            out_specs=(
                pl.BlockSpec(memory_space=pltpu.MemorySpace.SMEM),  # dino scalar
                pl.BlockSpec(memory_space=pltpu.MemorySpace.SMEM),  # bt scalar
                pl.BlockSpec(memory_space=pltpu.MemorySpace.VMEM),  # new center
            ),
            # EMA center update is a natural in-place update.
            input_output_aliases={3: 2},
            cost_estimate=cost,
            compiler_params=pltpu.CompilerParams(
                vmem_limit_bytes=_derive_vmem_limit_bytes(io_bytes)),
        )(inv_temps, student_out, teacher_out, self.center, barlow_in)

        self.center = new_center
        return dino_loss[0, 0], bt_loss[0, 0]


# ----------------------------------------------------------------------------
# Pure-JAX reference (for sanity checking the kernel)
# ----------------------------------------------------------------------------
def reference(student_out, teacher_out, barlow_out, center, loss_mod, epoch):
    n_crops, ng = loss_mod.n_crops, loss_mod.n_global_crops
    t_temp = float(loss_mod.teacher_temp_schedule[int(epoch)])
    s = student_out / loss_mod.student_temp
    t = jax.nn.softmax((teacher_out - center) / t_temp, axis=-1)
    s_chunks = jnp.split(s, n_crops)
    t_chunks = jnp.split(t, ng)
    dino, nd = 0.0, 0
    for ti in range(ng):
        for si in range(n_crops):
            if ti == si:
                continue
            dino += jnp.mean(jnp.sum(
                -t_chunks[ti] * jax.nn.log_softmax(s_chunks[si], axis=-1), -1))
            nd += 1
    z_chunks = jnp.split(barlow_out, n_crops)
    b = z_chunks[0].shape[0]
    bt, nb = 0.0, 0
    for i in range(n_crops):
        for j in range(n_crops):
            if i == j:
                continue
            z1 = (z_chunks[i] - z_chunks[i].mean(0)) / z_chunks[i].std(0, ddof=1)
            z2 = (z_chunks[j] - z_chunks[j].mean(0)) / z_chunks[j].std(0, ddof=1)
            c = z1.T @ z2 / b
            on = jnp.sum((jnp.diag(c) - 1.0) ** 2)
            off = jnp.sum(c ** 2) - jnp.sum(jnp.diag(c) ** 2)
            bt += loss_mod.bt_beta * (on + loss_mod.lmbda * off)
            nb += 1
    new_center = (center * loss_mod.center_momentum
                  + teacher_out.mean(0, keepdims=True)
                  * (1 - loss_mod.center_momentum))
    return dino / nd, bt / nb, new_center


if __name__ == "__main__":
    n_crops, n_global_crops = 4, 2
    batch_per_crop = 8
    out_channels = 128     # DINO head dim
    bt_dim = 64            # Barlow projector dim (exercises lane padding to 128)
    epoch = 3

    key = jax.random.PRNGKey(0)
    k1, k2, k3 = jax.random.split(key, 3)
    student_out = jax.random.normal(
        k1, (n_crops * batch_per_crop, out_channels), jnp.float32)
    teacher_out = jax.random.normal(
        k2, (n_global_crops * batch_per_crop, out_channels), jnp.float32)
    barlow_out = jax.random.normal(
        k3, (n_crops * batch_per_crop, bt_dim), jnp.float32)

    loss_mod = DinowTwinsLoss(
        n_crops=n_crops, n_global_crops=n_global_crops,
        out_channels=out_channels, center_momentum=0.9,
        student_temp=0.1, teacher_temp=0.07,
        warmup_teacher_temp=0.04, warmup_teacher_temp_epochs=5,
        max_epochs=10, lmbda=0.005, bt_beta=1.0)

    # Private copy of the center (the kernel call aliases/donates the live one),
    # and compute the reference *before* the kernel call.
    center_before = jnp.asarray(np.asarray(loss_mod.center))
    ref_dino, ref_bt, ref_center = reference(
        student_out, teacher_out, barlow_out, center_before, loss_mod, epoch)
    jax.block_until_ready((ref_dino, ref_bt, ref_center))

    dino_loss, bt_loss = loss_mod(student_out, teacher_out, barlow_out, epoch)
    jax.block_until_ready((dino_loss, bt_loss, loss_mod.center))

    assert np.allclose(np.asarray(dino_loss), np.asarray(ref_dino),
                       rtol=1e-4, atol=1e-4), (dino_loss, ref_dino)
    assert np.allclose(np.asarray(bt_loss), np.asarray(ref_bt),
                       rtol=1e-4, atol=1e-3), (bt_loss, ref_bt)
    assert np.allclose(np.asarray(loss_mod.center), np.asarray(ref_center),
                       rtol=1e-5, atol=1e-6)

    print("KERNEL_OK")
</pallas_src>

<mosaic_0001>
module attributes {stable_mosaic.version = 11 : i64} {
  func.func @dino_twins_kernel(%arg0: memref<2xf32, #tpu.memory_space<smem>>, %arg1: memref<32x128xf32, #tpu.memory_space<vmem>>, %arg2: memref<16x128xf32, #tpu.memory_space<vmem>>, %arg3: memref<1x128xf32, #tpu.memory_space<vmem>>, %arg4: memref<32x128xf32, #tpu.memory_space<vmem>>, %arg5: memref<1x1xf32, #tpu.memory_space<smem>>, %arg6: memref<1x1xf32, #tpu.memory_space<smem>>, %arg7: memref<1x128xf32, #tpu.memory_space<vmem>>) attributes {dimension_semantics = [], scalar_prefetch = 0 : i64, scratch_operands = 0 : i64, tpu.core_type = #tpu.core_type<tc>} {
    %c0 = arith.constant 0 : index
    %0 = memref.load %arg0[%c0] : memref<2xf32, #tpu.memory_space<smem>>
    %c1 = arith.constant 1 : index
    %1 = memref.load %arg0[%c1] : memref<2xf32, #tpu.memory_space<smem>>
    %c0_0 = arith.constant 0 : index
    %c0_1 = arith.constant 0 : index
    %2 = vector.load %arg1[%c0_0, %c0_1] : memref<32x128xf32, #tpu.memory_space<vmem>>, vector<32x128xf32>
    %3 = vector.broadcast %0 : f32 to vector<32x128xf32>
    %4 = arith.mulf %2, %3 : vector<32x128xf32>
    %c0_2 = arith.constant 0 : index
    %c0_3 = arith.constant 0 : index
    %5 = vector.load %arg2[%c0_2, %c0_3] : memref<16x128xf32, #tpu.memory_space<vmem>>, vector<16x128xf32>
    %c0_4 = arith.constant 0 : index
    %c0_5 = arith.constant 0 : index
    %6 = vector.load %arg3[%c0_4, %c0_5] : memref<1x128xf32, #tpu.memory_space<vmem>>, vector<1x128xf32>
    %7 = vector.broadcast %6 : vector<1x128xf32> to vector<16x128xf32>
    %8 = arith.subf %5, %7 : vector<16x128xf32>
    %9 = vector.broadcast %1 : f32 to vector<16x128xf32>
    %10 = arith.mulf %8, %9 : vector<16x128xf32>
    %cst = arith.constant dense<0xFF800000> : vector<16xf32>
    %11 = vector.multi_reduction <maximumf>, %10, %cst [1] : vector<16x128xf32> to vector<16xf32>
    %12 = vector.shape_cast %11 : vector<16xf32> to vector<16x1xf32>
    %13 = vector.broadcast %12 : vector<16x1xf32> to vector<16x128xf32>
    %14 = arith.subf %10, %13 : vector<16x128xf32>
    %15 = math.exp %14 : vector<16x128xf32>
    %cst_6 = arith.constant dense<0.000000e+00> : vector<16xf32>
    %16 = vector.multi_reduction <add>, %15, %cst_6 [1] : vector<16x128xf32> to vector<16xf32>
    %17 = vector.shape_cast %16 : vector<16xf32> to vector<16x1xf32>
    %18 = tpu.reciprocal %17 : vector<16x1xf32> -> vector<16x1xf32>
    %cst_7 = arith.constant dense<0xFF800000> : vector<32xf32>
    %19 = vector.multi_reduction <maximumf>, %4, %cst_7 [1] : vector<32x128xf32> to vector<32xf32>
    %20 = vector.shape_cast %19 : vector<32xf32> to vector<32x1xf32>
    %21 = vector.broadcast %20 : vector<32x1xf32> to vector<32x128xf32>
    %22 = arith.subf %4, %21 : vector<32x128xf32>
    %23 = math.exp %22 : vector<32x128xf32>
    %cst_8 = arith.constant dense<0.000000e+00> : vector<32xf32>
    %24 = vector.multi_reduction <add>, %23, %cst_8 [1] : vector<32x128xf32> to vector<32xf32>
    %25 = vector.shape_cast %24 : vector<32xf32> to vector<32x1xf32>
    %26 = math.log %25 : vector<32x1xf32>
    %27 = vector.broadcast %26 : vector<32x1xf32> to vector<32x128xf32>
    %28 = arith.subf %22, %27 : vector<32x128xf32>
    %29 = vector.extract_strided_slice %28 {offsets = [0, 0], sizes = [8, 128], strides = [1, 1]} : vector<32x128xf32> to vector<8x128xf32>
    %30 = vector.extract_strided_slice %28 {offsets = [8, 0], sizes = [8, 128], strides = [1, 1]} : vector<32x128xf32> to vector<8x128xf32>
    %31 = vector.extract_strided_slice %28 {offsets = [16, 0], sizes = [8, 128], strides = [1, 1]} : vector<32x128xf32> to vector<8x128xf32>
    %32 = vector.extract_strided_slice %28 {offsets = [24, 0], sizes = [8, 128], strides = [1, 1]} : vector<32x128xf32> to vector<8x128xf32>
    %33 = arith.addf %29, %30 : vector<8x128xf32>
    %34 = arith.addf %33, %31 : vector<8x128xf32>
    %35 = arith.addf %34, %32 : vector<8x128xf32>
    %cst_9 = arith.constant 0.000000e+00 : f32
    %36 = vector.broadcast %cst_9 : f32 to vector<8x1xf32>
    %37 = vector.extract_strided_slice %15 {offsets = [0, 0], sizes = [8, 128], strides = [1, 1]} : vector<16x128xf32> to vector<8x128xf32>
    %38 = vector.extract_strided_slice %18 {offsets = [0, 0], sizes = [8, 1], strides = [1, 1]} : vector<16x1xf32> to vector<8x1xf32>
    %39 = arith.subf %29, %35 : vector<8x128xf32>
    %40 = arith.mulf %37, %39 : vector<8x128xf32>
    %cst_10 = arith.constant dense<0.000000e+00> : vector<8xf32>
    %41 = vector.multi_reduction <add>, %40, %cst_10 [1] : vector<8x128xf32> to vector<8xf32>
    %42 = vector.shape_cast %41 : vector<8xf32> to vector<8x1xf32>
    %43 = arith.mulf %38, %42 : vector<8x1xf32>
    %44 = arith.addf %36, %43 : vector<8x1xf32>
    %45 = vector.extract_strided_slice %15 {offsets = [8, 0], sizes = [8, 128], strides = [1, 1]} : vector<16x128xf32> to vector<8x128xf32>
    %46 = vector.extract_strided_slice %18 {offsets = [8, 0], sizes = [8, 1], strides = [1, 1]} : vector<16x1xf32> to vector<8x1xf32>
    %47 = arith.subf %30, %35 : vector<8x128xf32>
    %48 = arith.mulf %45, %47 : vector<8x128xf32>
    %cst_11 = arith.constant dense<0.000000e+00> : vector<8xf32>
    %49 = vector.multi_reduction <add>, %48, %cst_11 [1] : vector<8x128xf32> to vector<8xf32>
    %50 = vector.shape_cast %49 : vector<8xf32> to vector<8x1xf32>
    %51 = arith.mulf %46, %50 : vector<8x1xf32>
    %52 = arith.addf %44, %51 : vector<8x1xf32>
    %53 = vector.shape_cast %52 : vector<8x1xf32> to vector<1x8x1xf32>
    %cst_12 = arith.constant dense<0.000000e+00> : vector<1xf32>
    %54 = vector.multi_reduction <add>, %53, %cst_12 [1, 2] : vector<1x8x1xf32> to vector<1xf32>
    %55 = vector.shape_cast %54 : vector<1xf32> to vector<1x1x1xf32>
    %56 = vector.extract %55[0, 0, 0] : f32 from vector<1x1x1xf32>
    %cst_13 = arith.constant 4.800000e+01 : f32
    %57 = arith.divf %56, %cst_13 : f32
    %c0_14 = arith.constant 0 : index
    %c0_15 = arith.constant 0 : index
    %58 = memref.load %arg5[%c0_14, %c0_15] : memref<1x1xf32, #tpu.memory_space<smem>>
    memref.store %57, %arg5[%c0_14, %c0_15] : memref<1x1xf32, #tpu.memory_space<smem>>
    %cst_16 = arith.constant 1.000000e+00 : f32
    %59 = vector.broadcast %cst_16 : f32 to vector<1x16xf32>
    %cst_17 = arith.constant dense<0.000000e+00> : vector<1x128xf32>
    %60 = tpu.matmul %59, %5, %cst_17 {dimension_numbers = #tpu.dot_dimension_numbers<[1], [0], [0], [1], [0, 0, 1, 1], [], []>} : vector<1x16xf32>, vector<16x128xf32>, vector<1x128xf32> -> vector<1x128xf32>
    %cst_18 = arith.constant 1.600000e+01 : f32
    %61 = vector.broadcast %cst_18 : f32 to vector<1x128xf32>
    %62 = arith.divf %60, %61 : vector<1x128xf32>
    %cst_19 = arith.constant 0.899999976 : f32
    %63 = vector.broadcast %cst_19 : f32 to vector<1x128xf32>
    %64 = arith.mulf %6, %63 : vector<1x128xf32>
    %cst_20 = arith.constant 1.000000e-01 : f32
    %65 = vector.broadcast %cst_20 : f32 to vector<1x128xf32>
    %66 = arith.mulf %62, %65 : vector<1x128xf32>
    %67 = arith.addf %64, %66 : vector<1x128xf32>
    %c0_21 = arith.constant 0 : index
    %c0_22 = arith.constant 0 : index
    %68 = vector.load %arg7[%c0_21, %c0_22] : memref<1x128xf32, #tpu.memory_space<vmem>>, vector<1x128xf32>
    tpu.vector_store %arg7[%c0_21, %c0_22], %67 {strides = array<i32>} : memref<1x128xf32, #tpu.memory_space<vmem>>, vector<1x128xf32>,
    %c0_23 = arith.constant 0 : index
    %c0_24 = arith.constant 0 : index
    %69 = vector.load %arg4[%c0_23, %c0_24] : memref<32x128xf32, #tpu.memory_space<vmem>>, vector<32x128xf32>
    %cst_25 = arith.constant 1.000000e+00 : f32
    %70 = vector.broadcast %cst_25 : f32 to vector<1x8xf32>
    %71 = vector.extract_strided_slice %69 {offsets = [0, 0], sizes = [8, 128], strides = [1, 1]} : vector<32x128xf32> to vector<8x128xf32>
    %cst_26 = arith.constant dense<0.000000e+00> : vector<1x128xf32>
    %72 = tpu.matmul %70, %71, %cst_26 {dimension_numbers = #tpu.dot_dimension_numbers<[1], [0], [0], [1], [0, 0, 1, 1], [], []>} : vector<1x8xf32>, vector<8x128xf32>, vector<1x128xf32> -> vector<1x128xf32>
    %cst_27 = arith.constant 8.000000e+00 : f32
    %73 = vector.broadcast %cst_27 : f32 to vector<1x128xf32>
    %74 = arith.divf %72, %73 : vector<1x128xf32>
    %75 = vector.broadcast %74 : vector<1x128xf32> to vector<8x128xf32>
    %76 = arith.subf %71, %75 : vector<8x128xf32>
    %77 = arith.mulf %76, %76 : vector<8x128xf32>
    %cst_28 = arith.constant dense<0.000000e+00> : vector<1x128xf32>
    %78 = tpu.matmul %70, %77, %cst_28 {dimension_numbers = #tpu.dot_dimension_numbers<[1], [0], [0], [1], [0, 0, 1, 1], [], []>} : vector<1x8xf32>, vector<8x128xf32>, vector<1x128xf32> -> vector<1x128xf32>
    %cst_29 = arith.constant 7.000000e+00 : f32
    %79 = vector.broadcast %cst_29 : f32 to vector<1x128xf32>
    %80 = arith.divf %78, %79 : vector<1x128xf32>
    %cst_30 = arith.constant 0.000000e+00 : f32
    %81 = vector.broadcast %cst_30 : f32 to vector<1x128xf32>
    %82 = arith.cmpf ogt, %80, %81 : vector<1x128xf32>
    %cst_31 = arith.constant 8.000000e+00 : f32
    %83 = vector.broadcast %cst_31 : f32 to vector<1x128xf32>
    %84 = arith.mulf %80, %83 : vector<1x128xf32>
    %85 = math.rsqrt %84 : vector<1x128xf32>
    %cst_32 = arith.constant 0.000000e+00 : f32
    %86 = vector.broadcast %cst_32 : f32 to vector<1x128xf32>
    %87 = arith.select %82, %85, %86 : vector<1x128xi1>, vector<1x128xf32>
    %88 = vector.broadcast %87 : vector<1x128xf32> to vector<8x128xf32>
    %89 = arith.mulf %76, %88 : vector<8x128xf32>
    %90 = vector.extract_strided_slice %69 {offsets = [8, 0], sizes = [8, 128], strides = [1, 1]} : vector<32x128xf32> to vector<8x128xf32>
    %cst_33 = arith.constant dense<0.000000e+00> : vector<1x128xf32>
    %91 = tpu.matmul %70, %90, %cst_33 {dimension_numbers = #tpu.dot_dimension_numbers<[1], [0], [0], [1], [0, 0, 1, 1], [], []>} : vector<1x8xf32>, vector<8x128xf32>, vector<1x128xf32> -> vector<1x128xf32>
    %cst_34 = arith.constant 8.000000e+00 : f32
    %92 = vector.broadcast %cst_34 : f32 to vector<1x128xf32>
    %93 = arith.divf %91, %92 : vector<1x128xf32>
    %94 = vector.broadcast %93 : vector<1x128xf32> to vector<8x128xf32>
    %95 = arith.subf %90, %94 : vector<8x128xf32>
    %96 = arith.mulf %95, %95 : vector<8x128xf32>
    %cst_35 = arith.constant dense<0.000000e+00> : vector<1x128xf32>
    %97 = tpu.matmul %70, %96, %cst_35 {dimension_numbers = #tpu.dot_dimension_numbers<[1], [0], [0], [1], [0, 0, 1, 1], [], []>} : vector<1x8xf32>, vector<8x128xf32>, vector<1x128xf32> -> vector<1x128xf32>
    %cst_36 = arith.constant 7.000000e+00 : f32
    %98 = vector.broadcast %cst_36 : f32 to vector<1x128xf32>
    %99 = arith.divf %97, %98 : vector<1x128xf32>
    %cst_37 = arith.constant 0.000000e+00 : f32
    %100 = vector.broadcast %cst_37 : f32 to vector<1x128xf32>
    %101 = arith.cmpf ogt, %99, %100 : vector<1x128xf32>
    %cst_38 = arith.constant 8.000000e+00 : f32
    %102 = vector.broadcast %cst_38 : f32 to vector<1x128xf32>
    %103 = arith.mulf %99, %102 : vector<1x128xf32>
    %104 = math.rsqrt %103 : vector<1x128xf32>
    %cst_39 = arith.constant 0.000000e+00 : f32
    %105 = vector.broadcast %cst_39 : f32 to vector<1x128xf32>
    %106 = arith.select %101, %104, %105 : vector<1x128xi1>, vector<1x128xf32>
    %107 = vector.broadcast %106 : vector<1x128xf32> to vector<8x128xf32>
    %108 = arith.mulf %95, %107 : vector<8x128xf32>
    %109 = vector.extract_strided_slice %69 {offsets = [16, 0], sizes = [8, 128], strides = [1, 1]} : vector<32x128xf32> to vector<8x128xf32>
    %cst_40 = arith.constant dense<0.000000e+00> : vector<1x128xf32>
    %110 = tpu.matmul %70, %109, %cst_40 {dimension_numbers = #tpu.dot_dimension_numbers<[1], [0], [0], [1], [0, 0, 1, 1], [], []>} : vector<1x8xf32>, vector<8x128xf32>, vector<1x128xf32> -> vector<1x128xf32>
    %cst_41 = arith.constant 8.000000e+00 : f32
    %111 = vector.broadcast %cst_41 : f32 to vector<1x128xf32>
    %112 = arith.divf %110, %111 : vector<1x128xf32>
    %113 = vector.broadcast %112 : vector<1x128xf32> to vector<8x128xf32>
    %114 = arith.subf %109, %113 : vector<8x128xf32>
    %115 = arith.mulf %114, %114 : vector<8x128xf32>
    %cst_42 = arith.constant dense<0.000000e+00> : vector<1x128xf32>
    %116 = tpu.matmul %70, %115, %cst_42 {dimension_numbers = #tpu.dot_dimension_numbers<[1], [0], [0], [1], [0, 0, 1, 1], [], []>} : vector<1x8xf32>, vector<8x128xf32>, vector<1x128xf32> -> vector<1x128xf32>
    %cst_43 = arith.constant 7.000000e+00 : f32
    %117 = vector.broadcast %cst_43 : f32 to vector<1x128xf32>
    %118 = arith.divf %116, %117 : vector<1x128xf32>
    %cst_44 = arith.constant 0.000000e+00 : f32
    %119 = vector.broadcast %cst_44 : f32 to vector<1x128xf32>
    %120 = arith.cmpf ogt, %118, %119 : vector<1x128xf32>
    %cst_45 = arith.constant 8.000000e+00 : f32
    %121 = vector.broadcast %cst_45 : f32 to vector<1x128xf32>
    %122 = arith.mulf %118, %121 : vector<1x128xf32>
    %123 = math.rsqrt %122 : vector<1x128xf32>
    %cst_46 = arith.constant 0.000000e+00 : f32
    %124 = vector.broadcast %cst_46 : f32 to vector<1x128xf32>
    %125 = arith.select %120, %123, %124 : vector<1x128xi1>, vector<1x128xf32>
    %126 = vector.broadcast %125 : vector<1x128xf32> to vector<8x128xf32>
    %127 = arith.mulf %114, %126 : vector<8x128xf32>
    %128 = vector.extract_strided_slice %69 {offsets = [24, 0], sizes = [8, 128], strides = [1, 1]} : vector<32x128xf32> to vector<8x128xf32>
    %cst_47 = arith.constant dense<0.000000e+00> : vector<1x128xf32>
    %129 = tpu.matmul %70, %128, %cst_47 {dimension_numbers = #tpu.dot_dimension_numbers<[1], [0], [0], [1], [0, 0, 1, 1], [], []>} : vector<1x8xf32>, vector<8x128xf32>, vector<1x128xf32> -> vector<1x128xf32>
    %cst_48 = arith.constant 8.000000e+00 : f32
    %130 = vector.broadcast %cst_48 : f32 to vector<1x128xf32>
    %131 = arith.divf %129, %130 : vector<1x128xf32>
    %132 = vector.broadcast %131 : vector<1x128xf32> to vector<8x128xf32>
    %133 = arith.subf %128, %132 : vector<8x128xf32>
    %134 = arith.mulf %133, %133 : vector<8x128xf32>
    %cst_49 = arith.constant dense<0.000000e+00> : vector<1x128xf32>
    %135 = tpu.matmul %70, %134, %cst_49 {dimension_numbers = #tpu.dot_dimension_numbers<[1], [0], [0], [1], [0, 0, 1, 1], [], []>} : vector<1x8xf32>, vector<8x128xf32>, vector<1x128xf32> -> vector<1x128xf32>
    %cst_50 = arith.constant 7.000000e+00 : f32
    %136 = vector.broadcast %cst_50 : f32 to vector<1x128xf32>
    %137 = arith.divf %135, %136 : vector<1x128xf32>
    %cst_51 = arith.constant 0.000000e+00 : f32
    %138 = vector.broadcast %cst_51 : f32 to vector<1x128xf32>
    %139 = arith.cmpf ogt, %137, %138 : vector<1x128xf32>
    %cst_52 = arith.constant 8.000000e+00 : f32
    %140 = vector.broadcast %cst_52 : f32 to vector<1x128xf32>
    %141 = arith.mulf %137, %140 : vector<1x128xf32>
    %142 = math.rsqrt %141 : vector<1x128xf32>
    %cst_53 = arith.constant 0.000000e+00 : f32
    %143 = vector.broadcast %cst_53 : f32 to vector<1x128xf32>
    %144 = arith.select %139, %142, %143 : vector<1x128xi1>, vector<1x128xf32>
    %145 = vector.broadcast %144 : vector<1x128xf32> to vector<8x128xf32>
    %146 = arith.mulf %133, %145 : vector<8x128xf32>
    %147 = tpu.concatenate %89, %108, %127, %146 in 1 : vector<8x128xf32>, vector<8x128xf32>, vector<8x128xf32>, vector<8x128xf32> -> vector<8x512xf32>
    %148 = vector.extract_strided_slice %147 {offsets = [0, 128], sizes = [8, 384], strides = [1, 1]} : vector<8x512xf32> to vector<8x384xf32>
    %cst_54 = arith.constant dense<0.000000e+00> : vector<128x384xf32>
    %149 = tpu.matmul %89, %148, %cst_54 {dimension_numbers = #tpu.dot_dimension_numbers<[0], [0], [1], [1], [0, 1, 1, 1], [], []>} : vector<8x128xf32>, vector<8x384xf32>, vector<128x384xf32> -> vector<128x384xf32>
    %150 = arith.mulf %149, %149 : vector<128x384xf32>
    %151 = vector.shape_cast %150 : vector<128x384xf32> to vector<1x128x384xf32>
    %cst_55 = arith.constant dense<0.000000e+00> : vector<1xf32>
    %152 = vector.multi_reduction <add>, %151, %cst_55 [1, 2] : vector<1x128x384xf32> to vector<1xf32>
    %153 = vector.shape_cast %152 : vector<1xf32> to vector<1x1x1xf32>
    %154 = vector.extract %153[0, 0, 0] : f32 from vector<1x1x1xf32>
    %cst_56 = arith.constant 0.000000e+00 : f32
    %155 = arith.addf %cst_56, %154 : f32
    %156 = arith.mulf %89, %108 : vector<8x128xf32>
    %cst_57 = arith.constant dense<0.000000e+00> : vector<1x128xf32>
    %157 = tpu.matmul %70, %156, %cst_57 {dimension_numbers = #tpu.dot_dimension_numbers<[1], [0], [0], [1], [0, 0, 1, 1], [], []>} : vector<1x8xf32>, vector<8x128xf32>, vector<1x128xf32> -> vector<1x128xf32>
    %158 = vector.shape_cast %157 : vector<1x128xf32> to vector<1x1x128xf32>
    %cst_58 = arith.constant dense<0.000000e+00> : vector<1xf32>
    %159 = vector.multi_reduction <add>, %158, %cst_58 [1, 2] : vector<1x1x128xf32> to vector<1xf32>
    %160 = vector.shape_cast %159 : vector<1xf32> to vector<1x1x1xf32>
    %161 = vector.extract %160[0, 0, 0] : f32 from vector<1x1x1xf32>
    %cst_59 = arith.constant 0.000000e+00 : f32
    %162 = arith.addf %cst_59, %161 : f32
    %163 = arith.mulf %157, %157 : vector<1x128xf32>
    %164 = vector.shape_cast %163 : vector<1x128xf32> to vector<1x1x128xf32>
    %cst_60 = arith.constant dense<0.000000e+00> : vector<1xf32>
    %165 = vector.multi_reduction <add>, %164, %cst_60 [1, 2] : vector<1x1x128xf32> to vector<1xf32>
    %166 = vector.shape_cast %165 : vector<1xf32> to vector<1x1x1xf32>
    %167 = vector.extract %166[0, 0, 0] : f32 from vector<1x1x1xf32>
    %cst_61 = arith.constant 0.000000e+00 : f32
    %168 = arith.addf %cst_61, %167 : f32
    %169 = arith.mulf %89, %127 : vector<8x128xf32>
    %cst_62 = arith.constant dense<0.000000e+00> : vector<1x128xf32>
    %170 = tpu.matmul %70, %169, %cst_62 {dimension_numbers = #tpu.dot_dimension_numbers<[1], [0], [0], [1], [0, 0, 1, 1], [], []>} : vector<1x8xf32>, vector<8x128xf32>, vector<1x128xf32> -> vector<1x128xf32>
    %171 = vector.shape_cast %170 : vector<1x128xf32> to vector<1x1x128xf32>
    %cst_63 = arith.constant dense<0.000000e+00> : vector<1xf32>
    %172 = vector.multi_reduction <add>, %171, %cst_63 [1, 2] : vector<1x1x128xf32> to vector<1xf32>
    %173 = vector.shape_cast %172 : vector<1xf32> to vector<1x1x1xf32>
    %174 = vector.extract %173[0, 0, 0] : f32 from vector<1x1x1xf32>
    %175 = arith.addf %162, %174 : f32
    %176 = arith.mulf %170, %170 : vector<1x128xf32>
    %177 = vector.shape_cast %176 : vector<1x128xf32> to vector<1x1x128xf32>
    %cst_64 = arith.constant dense<0.000000e+00> : vector<1xf32>
    %178 = vector.multi_reduction <add>, %177, %cst_64 [1, 2] : vector<1x1x128xf32> to vector<1xf32>
    %179 = vector.shape_cast %178 : vector<1xf32> to vector<1x1x1xf32>
    %180 = vector.extract %179[0, 0, 0] : f32 from vector<1x1x1xf32>
    %181 = arith.addf %168, %180 : f32
    %182 = arith.mulf %89, %146 : vector<8x128xf32>
    %cst_65 = arith.constant dense<0.000000e+00> : vector<1x128xf32>
    %183 = tpu.matmul %70, %182, %cst_65 {dimension_numbers = #tpu.dot_dimension_numbers<[1], [0], [0], [1], [0, 0, 1, 1], [], []>} : vector<1x8xf32>, vector<8x128xf32>, vector<1x128xf32> -> vector<1x128xf32>
    %184 = vector.shape_cast %183 : vector<1x128xf32> to vector<1x1x128xf32>
    %cst_66 = arith.constant dense<0.000000e+00> : vector<1xf32>
    %185 = vector.multi_reduction <add>, %184, %cst_66 [1, 2] : vector<1x1x128xf32> to vector<1xf32>
    %186 = vector.shape_cast %185 : vector<1xf32> to vector<1x1x1xf32>
    %187 = vector.extract %186[0, 0, 0] : f32 from vector<1x1x1xf32>
    %188 = arith.addf %175, %187 : f32
    %189 = arith.mulf %183, %183 : vector<1x128xf32>
    %190 = vector.shape_cast %189 : vector<1x128xf32> to vector<1x1x128xf32>
    %cst_67 = arith.constant dense<0.000000e+00> : vector<1xf32>
    %191 = vector.multi_reduction <add>, %190, %cst_67 [1, 2] : vector<1x1x128xf32> to vector<1xf32>
    %192 = vector.shape_cast %191 : vector<1xf32> to vector<1x1x1xf32>
    %193 = vector.extract %192[0, 0, 0] : f32 from vector<1x1x1xf32>
    %194 = arith.addf %181, %193 : f32
    %195 = vector.extract_strided_slice %147 {offsets = [0, 256], sizes = [8, 256], strides = [1, 1]} : vector<8x512xf32> to vector<8x256xf32>
    %cst_68 = arith.constant dense<0.000000e+00> : vector<128x256xf32>
    %196 = tpu.matmul %108, %195, %cst_68 {dimension_numbers = #tpu.dot_dimension_numbers<[0], [0], [1], [1], [0, 1, 1, 1], [], []>} : vector<8x128xf32>, vector<8x256xf32>, vector<128x256xf32> -> vector<128x256xf32>
    %197 = arith.mulf %196, %196 : vector<128x256xf32>
    %198 = vector.shape_cast %197 : vector<128x256xf32> to vector<1x128x256xf32>
    %cst_69 = arith.constant dense<0.000000e+00> : vector<1xf32>
    %199 = vector.multi_reduction <add>, %198, %cst_69 [1, 2] : vector<1x128x256xf32> to vector<1xf32>
    %200 = vector.shape_cast %199 : vector<1xf32> to vector<1x1x1xf32>
    %201 = vector.extract %200[0, 0, 0] : f32 from vector<1x1x1xf32>
    %202 = arith.addf %155, %201 : f32
    %203 = arith.mulf %108, %127 : vector<8x128xf32>
    %cst_70 = arith.constant dense<0.000000e+00> : vector<1x128xf32>
    %204 = tpu.matmul %70, %203, %cst_70 {dimension_numbers = #tpu.dot_dimension_numbers<[1], [0], [0], [1], [0, 0, 1, 1], [], []>} : vector<1x8xf32>, vector<8x128xf32>, vector<1x128xf32> -> vector<1x128xf32>
    %205 = vector.shape_cast %204 : vector<1x128xf32> to vector<1x1x128xf32>
    %cst_71 = arith.constant dense<0.000000e+00> : vector<1xf32>
    %206 = vector.multi_reduction <add>, %205, %cst_71 [1, 2] : vector<1x1x128xf32> to vector<1xf32>
    %207 = vector.shape_cast %206 : vector<1xf32> to vector<1x1x1xf32>
    %208 = vector.extract %207[0, 0, 0] : f32 from vector<1x1x1xf32>
    %209 = arith.addf %188, %208 : f32
    %210 = arith.mulf %204, %204 : vector<1x128xf32>
    %211 = vector.shape_cast %210 : vector<1x128xf32> to vector<1x1x128xf32>
    %cst_72 = arith.constant dense<0.000000e+00> : vector<1xf32>
    %212 = vector.multi_reduction <add>, %211, %cst_72 [1, 2] : vector<1x1x128xf32> to vector<1xf32>
    %213 = vector.shape_cast %212 : vector<1xf32> to vector<1x1x1xf32>
    %214 = vector.extract %213[0, 0, 0] : f32 from vector<1x1x1xf32>
    %215 = arith.addf %194, %214 : f32
    %216 = arith.mulf %108, %146 : vector<8x128xf32>
    %cst_73 = arith.constant dense<0.000000e+00> : vector<1x128xf32>
    %217 = tpu.matmul %70, %216, %cst_73 {dimension_numbers = #tpu.dot_dimension_numbers<[1], [0], [0], [1], [0, 0, 1, 1], [], []>} : vector<1x8xf32>, vector<8x128xf32>, vector<1x128xf32> -> vector<1x128xf32>
    %218 = vector.shape_cast %217 : vector<1x128xf32> to vector<1x1x128xf32>
    %cst_74 = arith.constant dense<0.000000e+00> : vector<1xf32>
    %219 = vector.multi_reduction <add>, %218, %cst_74 [1, 2] : vector<1x1x128xf32> to vector<1xf32>
    %220 = vector.shape_cast %219 : vector<1xf32> to vector<1x1x1xf32>
    %221 = vector.extract %220[0, 0, 0] : f32 from vector<1x1x1xf32>
    %222 = arith.addf %209, %221 : f32
    %223 = arith.mulf %217, %217 : vector<1x128xf32>
    %224 = vector.shape_cast %223 : vector<1x128xf32> to vector<1x1x128xf32>
    %cst_75 = arith.constant dense<0.000000e+00> : vector<1xf32>
    %225 = vector.multi_reduction <add>, %224, %cst_75 [1, 2] : vector<1x1x128xf32> to vector<1xf32>
    %226 = vector.shape_cast %225 : vector<1xf32> to vector<1x1x1xf32>
    %227 = vector.extract %226[0, 0, 0] : f32 from vector<1x1x1xf32>
    %228 = arith.addf %215, %227 : f32
    %229 = vector.extract_strided_slice %147 {offsets = [0, 384], sizes = [8, 128], strides = [1, 1]} : vector<8x512xf32> to vector<8x128xf32>
    %cst_76 = arith.constant dense<0.000000e+00> : vector<128x128xf32>
    %230 = tpu.matmul %127, %229, %cst_76 {dimension_numbers = #tpu.dot_dimension_numbers<[0], [0], [1], [1], [0, 1, 1, 1], [], []>} : vector<8x128xf32>, vector<8x128xf32>, vector<128x128xf32> -> vector<128x128xf32>
    %231 = arith.mulf %230, %230 : vector<128x128xf32>
    %232 = vector.shape_cast %231 : vector<128x128xf32> to vector<1x128x128xf32>
    %cst_77 = arith.constant dense<0.000000e+00> : vector<1xf32>
    %233 = vector.multi_reduction <add>, %232, %cst_77 [1, 2] : vector<1x128x128xf32> to vector<1xf32>
    %234 = vector.shape_cast %233 : vector<1xf32> to vector<1x1x1xf32>
    %235 = vector.extract %234[0, 0, 0] : f32 from vector<1x1x1xf32>
    %236 = arith.addf %202, %235 : f32
    %237 = arith.mulf %127, %146 : vector<8x128xf32>
    %cst_78 = arith.constant dense<0.000000e+00> : vector<1x128xf32>
    %238 = tpu.matmul %70, %237, %cst_78 {dimension_numbers = #tpu.dot_dimension_numbers<[1], [0], [0], [1], [0, 0, 1, 1], [], []>} : vector<1x8xf32>, vector<8x128xf32>, vector<1x128xf32> -> vector<1x128xf32>
    %239 = vector.shape_cast %238 : vector<1x128xf32> to vector<1x1x128xf32>
    %cst_79 = arith.constant dense<0.000000e+00> : vector<1xf32>
    %240 = vector.multi_reduction <add>, %239, %cst_79 [1, 2] : vector<1x1x128xf32> to vector<1xf32>
    %241 = vector.shape_cast %240 : vector<1xf32> to vector<1x1x1xf32>
    %242 = vector.extract %241[0, 0, 0] : f32 from vector<1x1x1xf32>
    %243 = arith.addf %222, %242 : f32
    %244 = arith.mulf %238, %238 : vector<1x128xf32>
    %245 = vector.shape_cast %244 : vector<1x128xf32> to vector<1x1x128xf32>
    %cst_80 = arith.constant dense<0.000000e+00> : vector<1xf32>
    %246 = vector.multi_reduction <add>, %245, %cst_80 [1, 2] : vector<1x1x128xf32> to vector<1xf32>
    %247 = vector.shape_cast %246 : vector<1xf32> to vector<1x1x1xf32>
    %248 = vector.extract %247[0, 0, 0] : f32 from vector<1x1x1xf32>
    %249 = arith.addf %228, %248 : f32
    %cst_81 = arith.constant 2.000000e+00 : f32
    %250 = arith.mulf %cst_81, %243 : f32
    %251 = arith.subf %249, %250 : f32
    %cst_82 = arith.constant 3.840000e+02 : f32
    %252 = arith.addf %251, %cst_82 : f32
    %253 = arith.subf %236, %249 : f32
    %cst_83 = arith.constant 5.000000e-03 : f32
    %254 = arith.mulf %cst_83, %253 : f32
    %255 = arith.addf %252, %254 : f32
    %cst_84 = arith.constant 2.000000e+00 : f32
    %256 = arith.mulf %cst_84, %255 : f32
    %cst_85 = arith.constant 1.200000e+01 : f32
    %257 = arith.divf %256, %cst_85 : f32
    %c0_86 = arith.constant 0 : index
    %c0_87 = arith.constant 0 : index
    %258 = memref.load %arg6[%c0_86, %c0_87] : memref<1x1xf32, #tpu.memory_space<smem>>
    memref.store %257, %arg6[%c0_86, %c0_87] : memref<1x1xf32, #tpu.memory_space<smem>>
    return
  }
}

</mosaic_0001>

<bundles_post_ra>
// kernel: tpu_custom_call.1
= control target key start
LH: loop header
LB: loop body
LE: loop exit
PB: predicated region body
PF: predicated region fallthrough
CT: control target
= control target key end

     0   :  { %13 = vsyncpa [#allocation6], 0  ;;  %s3581_s0 = inlined_call_operand.vmem [shape: f32[2], index: 0, kind: input, shape index: {}]   ;;  %s3582_s1 = inlined_call_operand.hbm [shape: f32[32,128], index: 1, kind: input, shape index: {}]   ;;  %s3583_s2 = inlined_call_operand.hbm [shape: f32[16,128], index: 2, kind: input, shape index: {}]   ;;  %s3584_s3 = inlined_call_operand.hbm [shape: f32[1,128], index: 3, kind: input, shape index: {}, may-alias: {3,7}]   ;;  %s3585_s4 = inlined_call_operand.hbm [shape: f32[32,128], index: 4, kind: input, shape index: {}]   ;;  %s3586_s5 = inlined_call_operand.hbm [shape: f32[1,1], index: 5, kind: output, shape index: {0}]   ;;  %s3587_s6 = inlined_call_operand.hbm [shape: f32[1,1], index: 6, kind: output, shape index: {1}]   ;;  %s3588_s7 = inlined_call_operand.hbm [shape: f32[1,128], index: 7, kind: output, shape index: {2}, may-alias: {3,7}]  }
   0x1   :  { %14 = vsyncpa [#allocation3], 0 }
   0x2   :  { %15 = vsyncpa [#allocation9], 0 }
   0x3   :  { %16 = vsyncpa [#allocation12], 0 }
   0x4   :  { %17 = vsyncpa [#allocation5], 0 }
   0x5   :  { %18 = vsyncpa [#allocation15], 0 }
   0x6   :  { %19 = vsyncpa [#allocation4], 0  ;;  %s26_s26 = sshll.u32 %s3581_s0, 4  ;;  %s3105_s27 = smov [#allocation8]   ;;  %s27_s26 = int_to_ptr.vmem [resolvable:$true] %s26_s26 }
   0x7   :  { %s47_s28 = sshll.u32 %s3105_s27, 4  ;;  %s48_s28 = int_to_ptr.vmem [resolvable:$true] %s47_s28 }
   0x8   :  { %s2971_s29 = scalar_lea.vmem %s48_s28, 256  ;;  %p2976_p1 = scmp.lt.s32.totalorder %s48_s28, %s48_s28 }
   0x9   :  { %p2972_p0 = scmp.ne.s32.totalorder %s48_s28, %s2971_s29  ;;  %p2977_p2 = scmp.lt.s32.totalorder %s2971_s29, %s2971_s29 }
   0xb   :  { %p2978_p3 = por %p2977_p2, %p2976_p1 }
   0xd   :  { %p2979_p4 = pnand %p2978_p3, %p2972_p0 }
   0xf   :  { %2982 = shalt.err (!%p2979_p4)
}
  0x10   :  { %s3106_s30 = smov 128   ;;  %s3107_s8 = smov 8  }
  0x11   :  { %53 = dma.hbm_to_vmem [thread:$0]  %s3583_s2, 256, %s48_s28, [#allocation9], %s3106_s30, %s3106_s30, %s3107_s8  }
  0x12   :  { %s2983_s0 = scalar_lea.vmem %s27_s26, 16  ;;  %p2988_p6 = scmp.lt.s32.totalorder %s27_s26, %s27_s26 }
  0x13   :  { %p2984_p5 = scmp.ne.s32.totalorder %s27_s26, %s2983_s0  ;;  %p2989_p7 = scmp.lt.s32.totalorder %s2983_s0, %s2983_s0 }
  0x15   :  { %p2990_p8 = por %p2989_p7, %p2988_p6 }
  0x17   :  { %p2991_p9 = pnand %p2990_p8, %p2984_p5 }
  0x19   :  { %2994 = shalt.err (!%p2991_p9)
}
  0x1a   :  { %s3108_s11 = smov [#allocation2]   ;;  %s3109_s12 = smov [#allocation7]  }
  0x1b   :  { %29 = dma.vmem_to_smem %s27_s26, 16, %s3108_s11, [#allocation6]  }
  0x1c   :  { %s35_s13 = sshll.u32 %s3109_s12, 4  ;;  %s3110_s14 = smov [#allocation10]   ;;  %s36_s13 = int_to_ptr.vmem [resolvable:$true] %s35_s13 }
  0x1d   :  { %s60_s15 = sshll.u32 %s3110_s14, 4  ;;  %s3003_s16 = scalar_lea.vmem %s36_s13, 512  ;;  %s61_s15 = int_to_ptr.vmem [resolvable:$true] %s60_s15 }
  0x1e   :  { %p3004_p10 = scmp.ne.s32.totalorder %s36_s13, %s3003_s16  ;;  %p3008_p11 = scmp.lt.s32.totalorder %s36_s13, %s36_s13 }
  0x1f   :  { %p3009_p12 = scmp.lt.s32.totalorder %s3003_s16, %s3003_s16 }
  0x21   :  { %p3010_p13 = por %p3009_p12, %p3008_p11 }
  0x23   :  { %p3011_p0 = pnand %p3010_p13, %p3004_p10 }
  0x25   :  { %3014 = shalt.err (!%p3011_p0)
}
  0x26   :  { %41 = dma.hbm_to_vmem [thread:$0]  %s3582_s1, 512, %s36_s13, [#allocation3], %s3106_s30, %s3106_s30, %s3107_s8  }
  0x27   :  { %s3023_s18 = scalar_lea.vmem %s61_s15, 16  ;;  %s3027_s19 = scalar_lea.vmem %s61_s15, 32 }
  0x28   :  { %p3024_p1 = scmp.ne.s32.totalorder %s61_s15, %s3023_s18  ;;  %p3028_p2 = scmp.lt.s32.totalorder %s61_s15, %s61_s15 }
  0x29   :  { %p3029_p3 = scmp.lt.s32.totalorder %s3027_s19, %s3023_s18 }
  0x2b   :  { %p3030_p4 = por %p3029_p3, %p3028_p2 }
  0x2d   :  { %p3031_p5 = pnand %p3030_p4, %p3024_p1 }
  0x2f   :  { %3034 = shalt.err (!%p3031_p5)
}
  0x30   :  { %63 = dma.hbm_to_vmem [thread:$0]  %s3584_s3, 16, %s61_s15, [#allocation9]  }
  0x31   :  { %s3111_s22 = smov [#allocation11]  }
  0x32   :  { %s69_s23 = sshll.u32 %s3111_s22, 4  ;;  %s70_s23 = int_to_ptr.vmem [resolvable:$true] %s69_s23 }
  0x33   :  { %s3043_s24 = scalar_lea.vmem %s70_s23, 512  ;;  %p3048_p7 = scmp.lt.s32.totalorder %s70_s23, %s70_s23 }
  0x34   :  { %p3044_p6 = scmp.ne.s32.totalorder %s70_s23, %s3043_s24  ;;  %p3049_p8 = scmp.lt.s32.totalorder %s3043_s24, %s3043_s24 }
  0x36   :  { %p3050_p9 = por %p3049_p8, %p3048_p7 }
  0x38   :  { %p3051_p10 = pnand %p3050_p9, %p3044_p6 }
  0x3a   :  { %3054 = shalt.err (!%p3051_p10)
}
  0x3b   :  { %75 = dma.hbm_to_vmem [thread:$0]  %s3585_s4, 512, %s70_s23, [#allocation12], %s3106_s30, %s3106_s30, %s3107_s8  }
  0x3c   :  { %3091 = dma.done.wait [#allocation6], 16  }
  0x3d   :  { %3092 = vsyncadd [#allocation6], 4294967280 }
  0x3e   :  { %3093 = dma.done.wait [#allocation3], 512  }
  0x3f   :  { %3094 = vsyncadd [#allocation3], 4294966784 }
  0x40   :  { %3095 = dma.done.wait [#allocation9], 272  }
  0x41   :  { %3096 = vsyncadd [#allocation9], 4294967024 }
  0x42   :  { %3097 = dma.done.wait [#allocation12], 512  }
  0x43   :  { %3098 = vsyncadd [#allocation12], 4294966784 }
  0x44   :  { %91 = sfence }
  0x45   :  { %v104_v0 = vld [vmem:[#allocation8 + $0x8] sm:$0xff]  ;;  %v107_v1 = vlaneseq  ;;  %v3182_v2 = vld [vmem:[#allocation11] sm:$0xff]  ;;  %v3112_v3 = vmov 0.0   ;;  %vm288_vm0 = vcmask 64512   ;;  %v3186_v4 = vld [vmem:[#allocation8] sm:$0xff]  ;;  %s92_s3 = sld [smem:[#allocation2]] }
  0x46   :  { %2757 = vmatprep.subr.mxu0 %v3112_v3  ;;  %2764 = vmatprep.subr.mxu1 %v3112_v3  ;;  %vm3113_vm1 = vmmov 0   ;;  %vm204_vm2 = vcmask 130048   ;;  %v3114_v7 = vmov 1.0   ;;  %v3197_v8 = vld [vmem:[#allocation11 + $0x8] sm:$0xff]  ;;  %v105_v9 = vld [vmem:[#allocation10] sm:$0x1] }
  0x47   :  { %v108_v5 = vshrl.u32 %v107_v1, 7  ;;  %2758 = vmatpush3.msra.mxu0 %v104_v0  ;;  %2765 = vmatpush3.msra.mxu1 %v3182_v2  ;;  %v94_v11 = vld [vmem:[#allocation7] sm:$0xff]  ;;  %v3223_v16 = vld [vmem:[#allocation11 + $0x18] sm:$0xff]  ;;  %s3233_s4 = sld [smem:[#allocation2 + $0x1]]  ;;  %v97_v21 = vld [vmem:[#allocation7 + $0x18] sm:$0xff]  ;;  %vm1483_vm7 = vcmask 1040384  }
  0x48   :  { %2766 = vmatprep.mubr.msk.f32.mxu1 %vm3113_vm1, %v3112_v3  ;;  %2759 = vmatprep.subr.mxu0 %v3112_v3  ;;  %v3213_v13 = vld [vmem:[#allocation11 + $0x10] sm:$0xff]  ;;  %v96_v18 = vld [vmem:[#allocation7 + $0x10] sm:$0xff]  ;;  %v280_v36 = vmul.f32 0.9, %v105_v9  ;;  %vm188_vm8 = vcmask 7168   ;;  %s3115_s26 = smov [#allocation16]  }
  0x49   :  { %v3192_v6 = vsub.s32 0, %v108_v5  ;;  %2767 = vmatmul.mubr.msk.f32.vlgmr.msra.gmra.mxu1 %vm288_vm0, %v3114_v7  ;;  %2760 = vmatpush3.msra.mxu0 %v3186_v4  ;;  %v95_v17 = vld [vmem:[#allocation7 + $0x8] sm:$0xff]  ;;  %s2591_s27 = sshll.u32 %s3115_s26, 4  ;;  %s2592_s27 = int_to_ptr.vmem [resolvable:$true] %s2591_s27 }
  0x4a   :  { %2761 = vmatprep.mubr.msk.f32.mxu0 %vm3113_vm1, %v3112_v3  ;;  %2774 = vmatprep.subr.mxu0 %v3112_v3  ;;  %s3055_s28 = scalar_lea.vmem %s2592_s27, 16  ;;  %s3059_s29 = scalar_lea.vmem %s2592_s27, 32 }
  0x4b   :  { %v3203_v10 = vrot.slane %v105_v9, %v3192_v6  ;;  %2762 = vmatmul.mubr.msk.f32.vlgmr.msra.gmra.mxu0 %vm204_vm2, %v3114_v7  ;;  %2769 = vmatprep.subr.mxu1 %v3112_v3  ;;  %v98_v14 = vstv %s92_s3  ;;  %p3056_p11 = scmp.ne.s32.totalorder %s2592_s27, %s3055_s28  ;;  %p3060_p12 = scmp.lt.s32.totalorder %s2592_s27, %s2592_s27 }
  0x4c   :  { %2775 = vmatpush3.msra.mxu0 %v3197_v8  ;;  %2776 = vmatprep.mubr.msk.f32.mxu0 %vm3113_vm1, %v3112_v3  ;;  %v99_v15 = vmul.f32 %v98_v14, %v94_v11  ;;  %v3235_v19 = vmul.f32 %v98_v14, %v95_v17  ;;  %v3238_v20 = vmul.f32 %v98_v14, %v96_v18  ;;  %p3061_p13 = scmp.lt.s32.totalorder %s3059_s29, %s3055_s28 }
  0x4d   :  { %v112_v12 = vsub.f32 %v3186_v4, %v3203_v10  ;;  %2784 = vmatprep.subr.mxu0 %v3112_v3  ;;  %2771 = vmatprep.mubr.msk.f32.mxu1 %vm3113_vm1, %v3112_v3  ;;  %v113_v22 = vsub.f32 %v104_v0, %v3203_v10  ;;  %v3242_v23 = vmul.f32 %v98_v14, %v97_v21  ;;  %v114_v24 = vstv %s3233_s4 }
  0x4e   :  { %133 = vmax.xlane.f32.xlu1 %v99_v15  ;;  %p3062_p0 = por %p3061_p13, %p3060_p12 }
  0x4f   :  { %2777 = vmatmul.mubr.msk.f32.vlgmr.msra.gmra.mxu0 %vm288_vm0, %v3114_v7  ;;  %v3248_v25 = vmul.f32 %v114_v24, %v113_v22 }
  0x50   :  { %2785 = vmatpush3.msra.mxu0 %v3213_v13  ;;  %2786 = vmatprep.mubr.msk.f32.mxu0 %vm3113_vm1, %v3112_v3  ;;  %p3063_p1 = pnand %p3062_p0, %p3056_p11 }
  0x51   :  { %2794 = vmatprep.subr.mxu0 %v3112_v3 }
  0x52   :  { %135 = vmax.xlane.f32.xlu1 %v3235_v19 }
  0x53   :  { %2787 = vmatmul.mubr.msk.f32.vlgmr.msra.gmra.mxu0 %vm288_vm0, %v3114_v7 }
  0x54   :  { %2795 = vmatpush3.msra.mxu0 %v3223_v16  ;;  %2796 = vmatprep.mubr.msk.f32.mxu0 %vm3113_vm1, %v3112_v3 }
  0x56   :  { %137 = vmax.xlane.f32.xlu1 %v3238_v20 }
  0x57   :  { %2797 = vmatmul.mubr.msk.f32.vlgmr.msra.gmra.mxu0 %vm288_vm0, %v3114_v7 }
  0x58   :  { %1065 = vmatprep.mubr.f32.mxu0 %v3112_v3 }
  0x5a   :  { %139 = vmax.xlane.f32.xlu1 %v3242_v23 }
  0x5e   :  { %119 = vmax.xlane.f32.xlu1 %v3248_v25 }
  0xd7   :  { %v134_v26 = vpop.xlane.xlu1 %133 }
  0xd8   :  { %v3251_v27 = vsub.f32 %v99_v15, %v134_v26 }
  0xda   :  { %v145_v28 = vmul.f32 1.442695, %v3251_v27 }
  0xdc   :  { %2931 = vpow2.f32 %v145_v28 }
  0xe9   :  { %v2932_v29 = vpop.eup %2931 }
  0xea   :  { %153 = vadd.xlane.f32.xlu1 %v2932_v29 }
 0x109   :  { %v357_v30 = vpop.f32.mrf.mxu1 }
 0x10a   :  { %v362_v31 = vmul.f32 0.125, %v357_v30 }
 0x10b   :  { %v274_v32 = vpop.f32.mrf.mxu0  ;;  %v2768_v33 = vpop.f32.mrf.mxu1 }
 0x10c   :  { %v366_v34 = vrot.slane %v362_v31, %v3192_v6  ;;  %v279_v35 = vmul.f32 0.0625, %v274_v32 }
 0x10d   :  { %v2763_v37 = vpop.f32.mrf.mxu0 }
 0x10e   :  { %v367_v38 = vsub.f32 %v3182_v2, %v366_v34  ;;  %v281_v39 = vmul.f32 0.1, %v279_v35 }
 0x10f   :  { %v516_v40 = vpop.f32.mrf.mxu0 }
 0x110   :  { %v368_v41 = vmul.f32 %v367_v38, %v367_v38  ;;  %v520_v42 = vmul.f32 0.125, %v516_v40  ;;  %v282_v43 = vadd.f32 %v281_v39, %v280_v36 }
 0x111   :  { %v2778_v44 = vpop.f32.mrf.mxu0 }
 0x112   :  { %v524_v45 = vrot.slane %v520_v42, %v3192_v6  ;;  %2770 = vmatpush3.msra.mxu1 %v368_v41  ;;  %283 = vst [vmem:[#allocation16] sm:$0x1] %v282_v43  ;;  %v136_v41 = vpop.xlane.xlu1 %135 }
 0x113   :  { %2772 = vmatmul.mubr.msk.f32.vlgmr.msra.gmra.mxu1 %vm288_vm0, %v3114_v7  ;;  %v673_v46 = vpop.f32.mrf.mxu0  ;;  %2779 = vmatprep.subr.mxu1 %v3112_v3 }
 0x114   :  { %v525_v47 = vsub.f32 %v3197_v8, %v524_v45  ;;  %v677_v48 = vmul.f32 0.125, %v673_v46  ;;  %2781 = vmatprep.mubr.msk.f32.mxu1 %vm3113_vm1, %v3112_v3 }
 0x115   :  { %v2788_v49 = vpop.f32.mrf.mxu0 }
 0x116   :  { %v526_v50 = vmul.f32 %v525_v47, %v525_v47  ;;  %v681_v51 = vrot.slane %v677_v48, %v3192_v6 }
 0x117   :  { %v830_v52 = vpop.f32.mrf.mxu0 }
 0x118   :  { %v682_v53 = vsub.f32 %v3213_v13, %v681_v51  ;;  %v834_v54 = vmul.f32 0.125, %v830_v52  ;;  %2780 = vmatpush3.msra.mxu1 %v526_v50 }
 0x119   :  { %2782 = vmatmul.mubr.msk.f32.vlgmr.msra.gmra.mxu1 %vm288_vm0, %v3114_v7  ;;  %2789 = vmatprep.subr.mxu1 %v3112_v3  ;;  %v2798_v55 = vpop.f32.mrf.mxu0 }
 0x11a   :  { %v683_v56 = vmul.f32 %v682_v53, %v682_v53  ;;  %v838_v57 = vrot.slane %v834_v54, %v3192_v6  ;;  %2791 = vmatprep.mubr.msk.f32.mxu1 %vm3113_vm1, %v3112_v3 }
 0x11c   :  { %v839_v58 = vsub.f32 %v3223_v16, %v838_v57  ;;  %2790 = vmatpush3.msra.mxu1 %v683_v56  ;;  %v3337_v57 = vsub.f32 %v3235_v19, %v136_v41 }
 0x11d   :  { %2792 = vmatmul.mubr.msk.f32.vlgmr.msra.gmra.mxu1 %vm288_vm0, %v3114_v7  ;;  %2799 = vmatprep.subr.mxu1 %v3112_v3 }
 0x11e   :  { %v840_v59 = vmul.f32 %v839_v58, %v839_v58  ;;  %2801 = vmatprep.mubr.msk.f32.mxu1 %vm3113_vm1, %v3112_v3 }
 0x120   :  { %2800 = vmatpush3.msra.mxu1 %v840_v59  ;;  %v147_v59 = vmul.f32 1.442695, %v3337_v57 }
 0x121   :  { %2802 = vmatmul.mubr.msk.f32.vlgmr.msra.gmra.mxu1 %vm288_vm0, %v3114_v7 }
 0x1d3   :  { %v435_v60 = vpop.f32.mrf.mxu1 }
 0x1d4   :  { %v440_v61 = vmul.f32 0.14285715, %v435_v60 }
 0x1d5   :  { %v2773_v62 = vpop.f32.mrf.mxu1 }
 0x1d6   :  { %v442_v63 = vmul.f32 8.0, %v440_v61  ;;  %vm441_vm3 = vcmp.gt.f32.partialorder %v440_v61, 0.0 }
 0x1d8   :  { %2933 = vrsqrt.f32 %v442_v63 }
 0x1d9   :  { %v593_v0 = vpop.f32.mrf.mxu1 }
 0x1da   :  { %v597_v1 = vmul.f32 0.14285715, %v593_v0 }
 0x1db   :  { %v2783_v2 = vpop.f32.mrf.mxu1 }
 0x1dc   :  { %v599_v5 = vmul.f32 8.0, %v597_v1  ;;  %vm598_vm4 = vcmp.gt.f32.partialorder %v597_v1, 0.0 }
 0x1dd   :  { %v750_v8 = vpop.f32.mrf.mxu1 }
 0x1de   :  { %2935 = vrsqrt.f32 %v599_v5  ;;  %v754_v9 = vmul.f32 0.14285715, %v750_v8 }
 0x1df   :  { %v2793_v11 = vpop.f32.mrf.mxu1 }
 0x1e0   :  { %v756_v13 = vmul.f32 8.0, %v754_v9  ;;  %vm755_vm5 = vcmp.gt.f32.partialorder %v754_v9, 0.0 }
 0x1e1   :  { %v907_v14 = vpop.f32.mrf.mxu1 }
 0x1e2   :  { %2937 = vrsqrt.f32 %v756_v13  ;;  %v911_v15 = vmul.f32 0.14285715, %v907_v14 }
 0x1e3   :  { %v2803_v16 = vpop.f32.mrf.mxu1 }
 0x1e4   :  { %v913_v17 = vmul.f32 8.0, %v911_v15  ;;  %vm912_vm6 = vcmp.gt.f32.partialorder %v911_v15, 0.0 }
 0x1e5   :  { %v2934_v18 = vpop.eup %2933 }
 0x1e6   :  { %v444_v21 = vsel %vm441_vm3, %v2934_v18, 0.0  ;;  %2939 = vrsqrt.f32 %v913_v17 }
 0x1e7   :  { %v448_v22 = vrot.slane %v444_v21, %v3192_v6 }
 0x1e9   :  { %v3280_v26 = vmul.f32 %v448_v22, %v367_v38 }
 0x1eb   :  { %v2936_v28 = vpop.eup %2935  ;;  %921 = vxpose.xlu0.b32.start.end [1/1] (short) %v3280_v26, 128 }
 0x1ec   :  { %v601_v29 = vsel %vm598_vm4, %v2936_v28, 0.0 }
 0x1ed   :  { %v605_v30 = vrot.slane %v601_v29, %v3192_v6 }
 0x1ef   :  { %v2938_v31 = vpop.eup %2937  ;;  %v3284_v32 = vmul.f32 %v605_v30, %v525_v47 }
 0x1f0   :  { %v758_v33 = vsel %vm755_vm5, %v2938_v31, 0.0 }
 0x1f1   :  { %v762_v34 = vrot.slane %v758_v33, %v3192_v6  ;;  %v1412_v35 = vmul.f32 %v3284_v32, %v3280_v26 }
 0x1f3   :  { %v2940_v36 = vpop.eup %2939  ;;  %v3289_v37 = vmul.f32 %v762_v34, %v682_v53 }
 0x1f4   :  { %v915_v38 = vsel %vm912_vm6, %v2940_v36, 0.0 }
 0x1f5   :  { %v919_v39 = vrot.slane %v915_v38, %v3192_v6  ;;  %1031 = vmatprep.subr.mxu0 %v3289_v37  ;;  %2197 = vxpose.xlu1.b32.start.end [1/1] (short) %v3289_v37, 128  ;;  %v138_v6 = vpop.xlane.xlu1 %137  ;;  %v2009_v48 = vmul.f32 %v3289_v37, %v3284_v32  ;;  %v1507_v18 = vmul.f32 %v3289_v37, %v3280_v26 }
 0x1f6   :  { %1032 = vmatpush1.msra.mxu0 %v3284_v32  ;;  %v3303_v42 = vsub.f32 %v3238_v20, %v138_v6 }
 0x1f7   :  { %v3295_v40 = vmul.f32 %v919_v39, %v839_v58  ;;  %2845 = vmatprep.subr.mxu0 %v3112_v3 }
 0x1f8   :  { %v149_v43 = vmul.f32 1.442695, %v3303_v42 }
 0x1f9   :  { %2804 = vmatprep.subr.mxu1 %v3295_v40  ;;  %v140_v45 = vpop.xlane.xlu1 %139  ;;  %v2103_v21 = vmul.f32 %v3295_v40, %v3284_v32  ;;  %v1601_v29 = vmul.f32 %v3295_v40, %v3280_v26  ;;  %v2463_v26 = vmul.f32 %v3295_v40, %v3289_v37 }
 0x1fa   :  { %2805 = vmatpush3.msra.mxu1 %v3295_v40  ;;  %2941 = vpow2.f32 %v149_v43  ;;  %v3344_v60 = vsub.f32 %v3242_v23, %v140_v45 }
 0x1fb   :  { %2830 = vmatprep.subr.mxu1 %v3112_v3  ;;  %2943 = vpow2.f32 %v147_v59 }
 0x1fc   :  { %v151_v19 = vmul.f32 1.442695, %v3344_v60 }
 0x1fd   :  { %v120_v46 = vpop.xlane.xlu1 %119 }
 0x1fe   :  { %v122_v63 = vsub.f32 %v3248_v25, %v120_v46  ;;  %2945 = vpow2.f32 %v151_v19  ;;  %v3366_v25 = vmul.f32 %v114_v24, %v112_v12 }
 0x200   :  { %v125_v1 = vmul.f32 1.442695, %v122_v63 }
 0x201   :  { %v3314_v49 = vpop.xlane.xlu1 %153 }
 0x202   :  { %2947 = vpow2.f32 %v125_v1 }
 0x203   :  { %2949 = vlog2.f32 %v3314_v49 }
 0x207   :  { %v2942_v44 = vpop.eup %2941 }
 0x208   :  { %v2944_v11 = vpop.eup %2943 }
 0x20b   :  { %v2946_v12 = vpop.eup %2945 }
 0x20f   :  { %v3382_v14 = vpop.eup %2947 }
 0x228   :  { %1695 = vxpose.xlu0.b32.start.end [1/1] (short) %v3284_v32, 128 }
 0x258   :  { %157 = vadd.xlane.f32.xlu1 %v2942_v44 }
 0x267   :  { %v937_v47 = vpop.trf.xlu0 }
 0x268   :  { %2622 = vmatmul.mubr.msk.f32.vlgmr.msra.gmra.mxu0 %vm288_vm0, %v937_v47  ;;  %2806 = vmatprep.mubr.msk.f32.mxu1 %vm288_vm0, %v937_v47 }
 0x269   :  { %2846 = vmatpush3.msra.mxu0 %v2009_v48  ;;  %1071 = vmatprep.mubr.f32.mxu0 %v3112_v3 }
 0x26a   :  { %2850 = vmatprep.subr.mxu0 %v3112_v3 }
 0x26b   :  { %v938_v20 = vpop.trf.xlu0 }
 0x26c   :  { %2623 = vmatmul.mubr.msk.f32.gmra.mxu0 %vm288_vm0, %v938_v20  ;;  %2807 = vmatmul.mubr.msk.f32.vlgmr.msra.gmra.mxu1 %vm288_vm0, %v938_v20 }
 0x26d   :  { %2831 = vmatpush3.msra.mxu1 %v1412_v35  ;;  %1077 = vmatprep.mubr.f32.mxu0 %v3112_v3 }
 0x26e   :  { %2835 = vmatprep.subr.mxu1 %v3112_v3 }
 0x26f   :  { %v939_v50 = vpop.trf.xlu0 }
 0x270   :  { %2624 = vmatmul.mubr.msk.f32.gmra.mxu0 %vm288_vm0, %v939_v50  ;;  %2809 = vmatprep.mubr.msk.f32.mxu1 %vm288_vm0, %v939_v50 }
 0x271   :  { %1083 = vmatprep.mubr.f32.mxu0 %v3112_v3  ;;  %v3321_v51 = vpop.trf.xlu1 }
 0x273   :  { %v940_v52 = vpop.trf.xlu0 }
 0x274   :  { %2625 = vmatmul.mubr.msk.f32.gmra.mxu0 %vm288_vm0, %v940_v52  ;;  %2810 = vmatmul.mubr.msk.f32.gmra.mxu1 %vm288_vm0, %v940_v52 }
 0x275   :  { %1089 = vmatprep.mubr.f32.mxu0 %v3112_v3  ;;  %v3326_v54 = vpop.trf.xlu1 }
 0x277   :  { %v941_v53 = vpop.trf.xlu0 }
 0x278   :  { %2626 = vmatmul.mubr.msk.f32.gmra.mxu0 %vm288_vm0, %v941_v53  ;;  %2812 = vmatprep.mubr.msk.f32.mxu1 %vm288_vm0, %v941_v53 }
 0x279   :  { %1095 = vmatprep.mubr.f32.mxu0 %v3112_v3  ;;  %v3334_v56 = vpop.trf.xlu1 }
 0x27b   :  { %v942_v55 = vpop.trf.xlu0 }
 0x27c   :  { %2627 = vmatmul.mubr.msk.f32.gmra.mxu0 %vm288_vm0, %v942_v55  ;;  %2813 = vmatmul.mubr.msk.f32.gmra.mxu1 %vm288_vm0, %v942_v55 }
 0x27d   :  { %1101 = vmatprep.mubr.f32.mxu0 %v3112_v3  ;;  %v3346_v62 = vpop.trf.xlu1 }
 0x27f   :  { %v943_v58 = vpop.trf.xlu0 }
 0x280   :  { %2628 = vmatmul.mubr.msk.f32.gmra.mxu0 %vm288_vm0, %v943_v58  ;;  %2815 = vmatprep.mubr.msk.f32.mxu1 %vm288_vm0, %v943_v58  ;;  %v2950_v58 = vpop.eup %2949 }
 0x281   :  { %1107 = vmatprep.mubr.f32.mxu0 %v3112_v3  ;;  %v3356_v23 = vpop.trf.xlu1  ;;  %v162_v63 = vmul.f32 0.6931472, %v2950_v58 }
 0x283   :  { %v944_v61 = vpop.trf.xlu0 }
 0x284   :  { %2629 = vmatmul.mubr.msk.f32.gmra.mxu0 %vm288_vm0, %v944_v61  ;;  %2816 = vmatmul.mubr.msk.f32.gmra.mxu1 %vm288_vm0, %v944_v61 }
 0x285   :  { %1113 = vmatprep.mubr.f32.mxu0 %v3112_v3  ;;  %v3368_v8 = vpop.trf.xlu1 }
 0x287   :  { %v945_v0 = vpop.trf.xlu0 }
 0x288   :  { %2630 = vmatmul.mubr.msk.f32.gmra.mxu0 %vm288_vm0, %v945_v0  ;;  %2818 = vmatprep.mubr.msk.f32.mxu1 %vm288_vm0, %v945_v0 }
 0x289   :  { %1119 = vmatprep.mubr.f32.mxu0 %v3112_v3  ;;  %v3377_v4 = vpop.trf.xlu1 }
 0x28b   :  { %v946_v2 = vpop.trf.xlu0 }
 0x28c   :  { %2631 = vmatmul.mubr.msk.f32.gmra.mxu0 %vm288_vm0, %v946_v2  ;;  %2819 = vmatmul.mubr.msk.f32.gmra.mxu1 %vm288_vm0, %v946_v2 }
 0x28d   :  { %1125 = vmatprep.mubr.f32.mxu0 %v3112_v3  ;;  %v2220_v13 = vpop.trf.xlu1 }
 0x28f   :  { %v947_v5 = vpop.trf.xlu0 }
 0x290   :  { %2632 = vmatmul.mubr.msk.f32.gmra.mxu0 %vm288_vm0, %v947_v5  ;;  %2821 = vmatprep.mubr.msk.f32.mxu1 %vm288_vm0, %v947_v5 }
 0x291   :  { %117 = vmax.xlane.f32.xlu0 %v3366_v25  ;;  %1131 = vmatprep.mubr.f32.mxu0 %v3112_v3  ;;  %v2221_v16 = vpop.trf.xlu1 }
 0x293   :  { %v948_v9 = vpop.trf.xlu0 }
 0x294   :  { %2633 = vmatmul.mubr.msk.f32.gmra.mxu0 %vm288_vm0, %v948_v9  ;;  %2822 = vmatmul.mubr.msk.f32.gmra.mxu1 %vm288_vm0, %v948_v9 }
 0x295   :  { %155 = vadd.xlane.f32.xlu0 %v2944_v11  ;;  %1137 = vmatprep.mubr.f32.mxu0 %v3112_v3  ;;  %v2222_v22 = vpop.trf.xlu1 }
 0x297   :  { %v949_v10 = vpop.trf.xlu0 }
 0x298   :  { %2634 = vmatmul.mubr.msk.f32.gmra.mxu0 %vm288_vm0, %v949_v10  ;;  %2824 = vmatprep.mubr.msk.f32.mxu1 %vm288_vm0, %v949_v10  ;;  %v169_v10 = vsub.f32 %v3251_v27, %v162_v63 }
 0x299   :  { %159 = vadd.xlane.f32.xlu0 %v2946_v12  ;;  %1143 = vmatprep.mubr.f32.mxu0 %v3112_v3  ;;  %v2223_v31 = vpop.trf.xlu1 }
 0x29b   :  { %v950_v24 = vpop.trf.xlu0 }
 0x29c   :  { %2635 = vmatmul.mubr.msk.f32.gmra.mxu0 %vm288_vm0, %v950_v24  ;;  %2825 = vmatmul.mubr.msk.f32.gmra.mxu1 %vm288_vm0, %v950_v24 }
 0x29d   :  { %129 = vadd.xlane.f32.xlu0 %v3382_v14  ;;  %1149 = vmatprep.mubr.f32.mxu0 %v3112_v3  ;;  %v2224_v33 = vpop.trf.xlu1 }
 0x29f   :  { %v951_v15 = vpop.trf.xlu0 }
 0x2a0   :  { %2636 = vmatmul.mubr.msk.f32.gmra.mxu0 %vm288_vm0, %v951_v15  ;;  %2827 = vmatprep.mubr.msk.f32.mxu1 %vm288_vm0, %v951_v15 }
 0x2a1   :  { %1155 = vmatprep.mubr.f32.mxu0 %v3112_v3  ;;  %v2225_v36 = vpop.trf.xlu1 }
 0x2a3   :  { %v952_v17 = vpop.trf.xlu0 }
 0x2a4   :  { %2637 = vmatmul.mubr.msk.f32.gmra.mxu0 %vm288_vm0, %v952_v17  ;;  %2828 = vmatmul.mubr.msk.f32.gmra.mxu1 %vm288_vm0, %v952_v17 }
 0x2a5   :  { %2832 = vmatprep.mubr.msk.f32.mxu1 %vm3113_vm1, %v3112_v3  ;;  %2847 = vmatprep.mubr.msk.f32.mxu0 %vm3113_vm1, %v3112_v3  ;;  %v2226_v38 = vpop.trf.xlu1 }
 0x2a7   :  { %v1711_v28 = vpop.trf.xlu0 }
 0x2a8   :  { %2833 = vmatmul.mubr.msk.f32.vlgmr.msra.gmra.mxu1 %vm288_vm0, %v3114_v7  ;;  %2848 = vmatmul.mubr.msk.f32.vlgmr.msra.gmra.mxu0 %vm288_vm0, %v3114_v7 }
 0x2a9   :  { %2836 = vmatpush3.msra.mxu1 %v1507_v18  ;;  %2851 = vmatpush3.msra.mxu0 %v2103_v21  ;;  %v2227_v41 = vpop.trf.xlu1 }
 0x2aa   :  { %2855 = vmatprep.subr.mxu0 %v3295_v40  ;;  %2837 = vmatprep.mubr.msk.f32.mxu1 %vm3113_vm1, %v3112_v3 }
 0x2ab   :  { %2840 = vmatprep.subr.mxu1 %v3112_v3  ;;  %2852 = vmatprep.mubr.msk.f32.mxu0 %vm3113_vm1, %v3112_v3  ;;  %v1712_v30 = vpop.trf.xlu0 }
 0x2ac   :  { %2838 = vmatmul.mubr.msk.f32.vlgmr.msra.gmra.mxu1 %vm288_vm0, %v3114_v7  ;;  %2853 = vmatmul.mubr.msk.f32.vlgmr.msra.gmra.mxu0 %vm288_vm0, %v3114_v7 }
 0x2ad   :  { %2841 = vmatpush3.msra.mxu1 %v1601_v29  ;;  %2856 = vmatpush3.msra.mxu0 %v3295_v40  ;;  %v2228_v43 = vpop.trf.xlu1 }
 0x2ae   :  { %1805 = vmatprep.subr.mxu1 %v3295_v40  ;;  %2842 = vmatprep.mubr.msk.f32.mxu1 %vm3113_vm1, %v3112_v3 }
 0x2af   :  { %2857 = vmatprep.mubr.msk.f32.mxu0 %vm288_vm0, %v3321_v51  ;;  %2881 = vmatprep.subr.mxu0 %v3112_v3  ;;  %v1713_v32 = vpop.trf.xlu0 }
 0x2b0   :  { %2843 = vmatmul.mubr.msk.f32.vlgmr.msra.gmra.mxu1 %vm288_vm0, %v3114_v7  ;;  %2858 = vmatmul.mubr.msk.f32.vlgmr.msra.gmra.mxu0 %vm288_vm0, %v3326_v54 }
 0x2b1   :  { %1806 = vmatpush1.msra.mxu1 %v3289_v37  ;;  %2882 = vmatpush3.msra.mxu0 %v2463_v26 }
 0x2b2   :  { %1839 = vmatprep.mubr.f32.mxu1 %v3112_v3  ;;  %2860 = vmatprep.mubr.msk.f32.mxu0 %vm288_vm0, %v3334_v56 }
 0x2b3   :  { %v1714_v34 = vpop.trf.xlu0 }
 0x2b4   :  { %2657 = vmatmul.mubr.msk.f32.vlgmr.msra.gmra.mxu1 %vm288_vm0, %v1711_v28  ;;  %2861 = vmatmul.mubr.msk.f32.gmra.mxu0 %vm288_vm0, %v3346_v62 }
 0x2b5   :  { %1845 = vmatprep.mubr.f32.mxu1 %v3112_v3  ;;  %2863 = vmatprep.mubr.msk.f32.mxu0 %vm288_vm0, %v3356_v23 }
 0x2b7   :  { %v1715_v35 = vpop.trf.xlu0 }
 0x2b8   :  { %2658 = vmatmul.mubr.msk.f32.gmra.mxu1 %vm288_vm0, %v1712_v30  ;;  %2864 = vmatmul.mubr.msk.f32.gmra.mxu0 %vm288_vm0, %v3368_v8 }
 0x2b9   :  { %1851 = vmatprep.mubr.f32.mxu1 %v3112_v3  ;;  %2866 = vmatprep.mubr.msk.f32.mxu0 %vm288_vm0, %v3377_v4 }
 0x2bb   :  { %v1716_v37 = vpop.trf.xlu0 }
 0x2bc   :  { %2659 = vmatmul.mubr.msk.f32.gmra.mxu1 %vm288_vm0, %v1713_v32  ;;  %2867 = vmatmul.mubr.msk.f32.gmra.mxu0 %vm288_vm0, %v2220_v13 }
 0x2bd   :  { %1857 = vmatprep.mubr.f32.mxu1 %v3112_v3  ;;  %2869 = vmatprep.mubr.msk.f32.mxu0 %vm288_vm0, %v2221_v16 }
 0x2bf   :  { %v1717_v39 = vpop.trf.xlu0 }
 0x2c0   :  { %2660 = vmatmul.mubr.msk.f32.gmra.mxu1 %vm288_vm0, %v1714_v34  ;;  %2870 = vmatmul.mubr.msk.f32.gmra.mxu0 %vm288_vm0, %v2222_v22 }
 0x2c1   :  { %1863 = vmatprep.mubr.f32.mxu1 %v3112_v3  ;;  %2872 = vmatprep.mubr.msk.f32.mxu0 %vm288_vm0, %v2223_v31 }
 0x2c3   :  { %v1718_v40 = vpop.trf.xlu0 }
 0x2c4   :  { %2661 = vmatmul.mubr.msk.f32.gmra.mxu1 %vm288_vm0, %v1715_v35  ;;  %2873 = vmatmul.mubr.msk.f32.gmra.mxu0 %vm288_vm0, %v2224_v33 }
 0x2c5   :  { %1869 = vmatprep.mubr.f32.mxu1 %v3112_v3  ;;  %2875 = vmatprep.mubr.msk.f32.mxu0 %vm288_vm0, %v2225_v36 }
 0x2c7   :  { %v1719_v6 = vpop.trf.xlu0 }
 0x2c8   :  { %2662 = vmatmul.mubr.msk.f32.gmra.mxu1 %vm288_vm0, %v1716_v37  ;;  %2876 = vmatmul.mubr.msk.f32.gmra.mxu0 %vm288_vm0, %v2226_v38 }
 0x2c9   :  { %1875 = vmatprep.mubr.f32.mxu1 %v3112_v3  ;;  %2878 = vmatprep.mubr.msk.f32.mxu0 %vm288_vm0, %v2227_v41 }
 0x2cb   :  { %v1720_v44 = vpop.trf.xlu0 }
 0x2cc   :  { %2663 = vmatmul.mubr.msk.f32.gmra.mxu1 %vm288_vm0, %v1717_v39  ;;  %2879 = vmatmul.mubr.msk.f32.gmra.mxu0 %vm288_vm0, %v2228_v43 }
 0x2cd   :  { %1881 = vmatprep.mubr.f32.mxu1 %v3112_v3  ;;  %2883 = vmatprep.mubr.msk.f32.mxu0 %vm3113_vm1, %v3112_v3 }
 0x2cf   :  { %v1721_v45 = vpop.trf.xlu0 }
 0x2d0   :  { %2664 = vmatmul.mubr.msk.f32.gmra.mxu1 %vm288_vm0, %v1718_v40  ;;  %2884 = vmatmul.mubr.msk.f32.vlgmr.msra.gmra.mxu0 %vm288_vm0, %v3114_v7 }
 0x2d1   :  { %1887 = vmatprep.mubr.f32.mxu1 %v3112_v3 }
 0x2d3   :  { %v1722_v46 = vpop.trf.xlu0 }
 0x2d4   :  { %2665 = vmatmul.mubr.msk.f32.gmra.mxu1 %vm288_vm0, %v1719_v6 }
 0x2d5   :  { %1893 = vmatprep.mubr.f32.mxu1 %v3112_v3 }
 0x2d7   :  { %v1723_v47 = vpop.trf.xlu0 }
 0x2d8   :  { %2666 = vmatmul.mubr.msk.f32.gmra.mxu1 %vm288_vm0, %v1720_v44 }
 0x2d9   :  { %1899 = vmatprep.mubr.f32.mxu1 %v3112_v3 }
 0x2db   :  { %v1724_v7 = vpop.trf.xlu0 }
 0x2dc   :  { %2667 = vmatmul.mubr.msk.f32.gmra.mxu1 %vm288_vm0, %v1721_v45 }
 0x2dd   :  { %1905 = vmatprep.mubr.f32.mxu1 %v3112_v3 }
 0x2df   :  { %v1725_v48 = vpop.trf.xlu0 }
 0x2e0   :  { %2668 = vmatmul.mubr.msk.f32.gmra.mxu1 %vm288_vm0, %v1722_v46 }
 0x2e1   :  { %1911 = vmatprep.mubr.f32.mxu1 %v3112_v3  ;;  %v158_v51 = vpop.xlane.xlu1 %157 }
 0x2e2   :  { %2951 = vlog2.f32 %v158_v51 }
 0x2e3   :  { %v1726_v20 = vpop.trf.xlu0 }
 0x2e4   :  { %2669 = vmatmul.mubr.msk.f32.gmra.mxu1 %vm288_vm0, %v1723_v47 }
 0x2e5   :  { %1917 = vmatprep.mubr.f32.mxu1 %v3112_v3 }
 0x2e8   :  { %2670 = vmatmul.mubr.msk.f32.gmra.mxu1 %vm288_vm0, %v1724_v7 }
 0x2e9   :  { %1923 = vmatprep.mubr.f32.mxu1 %v3112_v3 }
 0x2ec   :  { %2671 = vmatmul.mubr.msk.f32.gmra.mxu1 %vm288_vm0, %v1725_v48 }
 0x2ed   :  { %1929 = vmatprep.mubr.f32.mxu1 %v3112_v3 }
 0x2ef   :  { %v2952_v3 = vpop.eup %2951 }
 0x2f0   :  { %2672 = vmatmul.mubr.msk.f32.gmra.mxu1 %vm288_vm0, %v1726_v20  ;;  %v166_v2 = vmul.f32 0.6931472, %v2952_v3 }
 0x2f2   :  { %v171_v17 = vsub.f32 %v3303_v42, %v166_v2 }
 0x31a   :  { %v118_v50 = vpop.xlane.xlu0 %117 }
 0x31b   :  { %v121_v52 = vsub.f32 %v3366_v25, %v118_v50 }
 0x31d   :  { %v123_v53 = vmul.f32 1.442695, %v121_v52 }
 0x31e   :  { %v156_v54 = vpop.xlane.xlu0 %155 }
 0x31f   :  { %2953 = vpow2.f32 %v123_v53 }
 0x320   :  { %2955 = vlog2.f32 %v156_v54 }
 0x322   :  { %v160_v55 = vpop.xlane.xlu0 %159 }
 0x323   :  { %2957 = vlog2.f32 %v160_v55 }
 0x328   :  { %v1067_v56 = vpop.f32.mrf.mxu0 }
 0x329   :  { %v1307_v59 = vmul.f32 %v1067_v56, %v1067_v56 }
 0x32a   :  { %v1069_v61 = vpop.f32.mrf.mxu0 }
 0x32b   :  { %v1308_v62 = vmul.f32 %v1069_v61, %v1069_v61 }
 0x32c   :  { %v2954_v19 = vpop.eup %2953  ;;  %v2808_v0 = vpop.f32.mrf.mxu1 }
 0x32d   :  { %v1073_v23 = vpop.f32.mrf.mxu0  ;;  %v2956_v1 = vpop.eup %2955  ;;  %127 = vadd.xlane.f32.xlu1 %v2954_v19  ;;  %v1355_v49 = vadd.f32 %v1308_v62, %v1307_v59  ;;  %v1312_v28 = vmul.f32 %v2808_v0, %v2808_v0 }
 0x32e   :  { %v164_v25 = vmul.f32 0.6931472, %v2956_v1  ;;  %v1228_v5 = vpop.f32.mrf.mxu1  ;;  %v1310_v11 = vmul.f32 %v1073_v23, %v1073_v23 }
 0x32f   :  { %v1075_v8 = vpop.f32.mrf.mxu0  ;;  %v1309_v9 = vmul.f32 %v1228_v5, %v1228_v5 }
 0x330   :  { %v2958_v4 = vpop.eup %2957  ;;  %v170_v24 = vsub.f32 %v3337_v57, %v164_v25  ;;  %v1311_v16 = vmul.f32 %v1075_v8, %v1075_v8 }
 0x331   :  { %v1079_v12 = vpop.f32.mrf.mxu0  ;;  %v168_v13 = vmul.f32 0.6931472, %v2958_v4  ;;  %v1356_v15 = vadd.f32 %v1355_v49, %v1309_v9 }
 0x332   :  { %v173_v18 = vadd.f32 %v170_v24, %v169_v10  ;;  %v1313_v33 = vmul.f32 %v1079_v12, %v1079_v12 }
 0x333   :  { %v1081_v21 = vpop.f32.mrf.mxu0  ;;  %v172_v22 = vsub.f32 %v3344_v60, %v168_v13  ;;  %v1357_v29 = vadd.f32 %v1356_v15, %v1310_v11 }
 0x334   :  { %v174_v30 = vadd.f32 %v173_v18, %v171_v17  ;;  %v2811_v31 = vpop.f32.mrf.mxu1  ;;  %v1314_v36 = vmul.f32 %v1081_v21, %v1081_v21 }
 0x335   :  { %v1085_v26 = vpop.f32.mrf.mxu0  ;;  %v1358_v32 = vadd.f32 %v1357_v29, %v1311_v16  ;;  %v1318_v20 = vmul.f32 %v2811_v31, %v2811_v31 }
 0x336   :  { %v175_v27 = vadd.f32 %v174_v30, %v172_v22  ;;  %v1238_v34 = vpop.f32.mrf.mxu1  ;;  %v1316_v44 = vmul.f32 %v1085_v26, %v1085_v26 }
 0x337   :  { %v1087_v35 = vpop.f32.mrf.mxu0  ;;  %v1359_v57 = vadd.f32 %v1358_v32, %v1312_v28  ;;  %v1315_v40 = vmul.f32 %v1238_v34, %v1238_v34 }
 0x338   :  { %v182_v37 = vsub.f32 %v170_v24, %v175_v27  ;;  %v176_v38 = vsub.f32 %v169_v10, %v175_v27  ;;  %v1317_v47 = vmul.f32 %v1087_v35, %v1087_v35 }
 0x339   :  { %v1091_v39 = vpop.f32.mrf.mxu0  ;;  %v1360_v42 = vadd.f32 %v1359_v57, %v1313_v33 }
 0x33a   :  { %v183_v41 = vmul.f32 %v3382_v14, %v182_v37  ;;  %v177_v60 = vmul.f32 %v2954_v19, %v176_v38  ;;  %v1319_v53 = vmul.f32 %v1091_v39, %v1091_v39 }
 0x33b   :  { %v1093_v6 = vpop.f32.mrf.mxu0  ;;  %v1361_v43 = vadd.f32 %v1360_v42, %v1314_v36 }
 0x33c   :  { %184 = vadd.xlane.f32.xlu0 %v183_v41  ;;  %178 = vadd.xlane.f32.xlu1 %v177_v60  ;;  %v2814_v7 = vpop.f32.mrf.mxu1  ;;  %v1320_v14 = vmul.f32 %v1093_v6, %v1093_v6 }
 0x33d   :  { %v1097_v45 = vpop.f32.mrf.mxu0  ;;  %v1362_v46 = vadd.f32 %v1361_v43, %v1315_v40  ;;  %v1324_v2 = vmul.f32 %v2814_v7, %v2814_v7 }
 0x33e   :  { %v1248_v54 = vpop.f32.mrf.mxu1  ;;  %v1322_v19 = vmul.f32 %v1097_v45, %v1097_v45 }
 0x33f   :  { %v1099_v48 = vpop.f32.mrf.mxu0  ;;  %v1363_v50 = vadd.f32 %v1362_v46, %v1316_v44  ;;  %v1321_v61 = vmul.f32 %v1248_v54, %v1248_v54 }
 0x340   :  { %v1323_v23 = vmul.f32 %v1099_v48, %v1099_v48 }
 0x341   :  { %v1103_v51 = vpop.f32.mrf.mxu0  ;;  %v1364_v52 = vadd.f32 %v1363_v50, %v1317_v47 }
 0x342   :  { %v1325_v9 = vmul.f32 %v1103_v51, %v1103_v51 }
 0x343   :  { %v1105_v55 = vpop.f32.mrf.mxu0  ;;  %v1365_v56 = vadd.f32 %v1364_v52, %v1318_v20 }
 0x344   :  { %v2817_v1 = vpop.f32.mrf.mxu1  ;;  %v1326_v12 = vmul.f32 %v1105_v55, %v1105_v55 }
 0x345   :  { %v1109_v58 = vpop.f32.mrf.mxu0  ;;  %v1366_v59 = vadd.f32 %v1365_v56, %v1319_v53  ;;  %v1330_v32 = vmul.f32 %v2817_v1, %v2817_v1 }
 0x346   :  { %v1258_v11 = vpop.f32.mrf.mxu1  ;;  %v1328_v21 = vmul.f32 %v1109_v58, %v1109_v58 }
 0x347   :  { %v1111_v3 = vpop.f32.mrf.mxu0  ;;  %v1367_v62 = vadd.f32 %v1366_v59, %v1320_v14  ;;  %v1327_v16 = vmul.f32 %v1258_v11, %v1258_v11 }
 0x348   :  { %v1329_v30 = vmul.f32 %v1111_v3, %v1111_v3 }
 0x349   :  { %v1115_v63 = vpop.f32.mrf.mxu0  ;;  %v1368_v0 = vadd.f32 %v1367_v62, %v1321_v61 }
 0x34a   :  { %v1331_v35 = vmul.f32 %v1115_v63, %v1115_v63 }
 0x34b   :  { %v1117_v49 = vpop.f32.mrf.mxu0  ;;  %v1369_v25 = vadd.f32 %v1368_v0, %v1322_v19 }
 0x34c   :  { %v2820_v24 = vpop.f32.mrf.mxu1  ;;  %v1332_v38 = vmul.f32 %v1117_v49, %v1117_v49 }
 0x34d   :  { %v1121_v5 = vpop.f32.mrf.mxu0  ;;  %v1370_v8 = vadd.f32 %v1369_v25, %v1323_v23  ;;  %v1336_v48 = vmul.f32 %v2820_v24, %v2820_v24 }
 0x34e   :  { %v1268_v22 = vpop.f32.mrf.mxu1  ;;  %v1334_v43 = vmul.f32 %v1121_v5, %v1121_v5 }
 0x34f   :  { %v1123_v4 = vpop.f32.mrf.mxu0  ;;  %v1371_v10 = vadd.f32 %v1370_v8, %v1324_v2  ;;  %v1333_v41 = vmul.f32 %v1268_v22, %v1268_v22 }
 0x350   :  { %v1335_v47 = vmul.f32 %v1123_v4, %v1123_v4 }
 0x351   :  { %v1127_v13 = vpop.f32.mrf.mxu0  ;;  %v1372_v15 = vadd.f32 %v1371_v10, %v1325_v9 }
 0x352   :  { %v1337_v53 = vmul.f32 %v1127_v13, %v1127_v13 }
 0x353   :  { %v1129_v17 = vpop.f32.mrf.mxu0  ;;  %v1373_v18 = vadd.f32 %v1372_v15, %v1326_v12 }
 0x354   :  { %v2823_v31 = vpop.f32.mrf.mxu1  ;;  %v1338_v14 = vmul.f32 %v1129_v17, %v1129_v17 }
 0x355   :  { %v1133_v28 = vpop.f32.mrf.mxu0  ;;  %v1374_v29 = vadd.f32 %v1373_v18, %v1327_v16  ;;  %v1342_v16 = vmul.f32 %v2823_v31, %v2823_v31 }
 0x356   :  { %v1278_v57 = vpop.f32.mrf.mxu1  ;;  %v1340_v2 = vmul.f32 %v1133_v28, %v1133_v28 }
 0x357   :  { %v1135_v26 = vpop.f32.mrf.mxu0  ;;  %v1375_v33 = vadd.f32 %v1374_v29, %v1328_v21  ;;  %v1339_v58 = vmul.f32 %v1278_v57, %v1278_v57 }
 0x358   :  { %v1341_v11 = vmul.f32 %v1135_v26, %v1135_v26 }
 0x359   :  { %v1139_v27 = vpop.f32.mrf.mxu0  ;;  %v1376_v34 = vadd.f32 %v1375_v33, %v1329_v30 }
 0x35a   :  { %v1343_v22 = vmul.f32 %v1139_v27, %v1139_v27 }
 0x35b   :  { %v3493_v36 = vpop.f32.mrf.mxu0  ;;  %v1377_v37 = vadd.f32 %v1376_v34, %v1330_v32 }
 0x35c   :  { %v3497_v42 = vpop.f32.mrf.mxu1  ;;  %v1344_v31 = vmul.f32 %v3493_v36, %v3493_v36 }
 0x35d   :  { %v3495_v39 = vpop.f32.mrf.mxu0  ;;  %v1378_v40 = vadd.f32 %v1377_v37, %v1331_v35 }
 0x35e   :  { %v1288_v45 = vpop.f32.mrf.mxu1 }
 0x35f   :  { %v3499_v60 = vpop.f32.mrf.mxu0  ;;  %v1379_v6 = vadd.f32 %v1378_v40, %v1332_v38 }
 0x360   :  { %v1347_v36 = vmul.f32 %v3499_v60, %v3499_v60 }
 0x361   :  { %v3501_v44 = vpop.f32.mrf.mxu0  ;;  %v1380_v46 = vadd.f32 %v1379_v6, %v1333_v41  ;;  %v1345_v6 = vmul.f32 %v1288_v45, %v1288_v45 }
 0x363   :  { %v3503_v7 = vpop.f32.mrf.mxu0  ;;  %v1381_v20 = vadd.f32 %v1380_v46, %v1334_v43 }
 0x364   :  { %v3507_v51 = vpop.f32.mrf.mxu1 }
 0x365   :  { %v3505_v50 = vpop.f32.mrf.mxu0  ;;  %v1382_v52 = vadd.f32 %v1381_v20, %v1335_v47 }
 0x366   :  { %v3511_v55 = vpop.f32.mrf.mxu1 }
 0x367   :  { %v3509_v54 = vpop.f32.mrf.mxu0  ;;  %v1383_v56 = vadd.f32 %v1382_v52, %v1336_v48  ;;  %v1346_v52 = vmul.f32 %v3495_v39, %v3495_v39 }
 0x368   :  { %v1479_v61 = vpop.f32.mrf.mxu1 }
 0x369   :  { %v2076_v59 = vpop.f32.mrf.mxu0  ;;  %v1384_v3 = vadd.f32 %v1383_v56, %v1337_v53  ;;  %v1495_v19 = vmul.f32 %v1479_v61, %v1479_v61  ;;  %v3515_v1 = vsel %vm1483_vm7, %v1479_v61, 0.0 }
 0x36a   :  { %v2091_v62 = vmul.f32 %v2076_v59, %v2076_v59  ;;  %v2080_v63 = vsel %vm1483_vm7, %v2076_v59, 0.0  ;;  %v2834_v0 = vpop.f32.mrf.mxu1 }
 0x36b   :  { %2081 = vadd.xlane.f32.xlu0 %v2080_v63  ;;  %v2849_v23 = vpop.f32.mrf.mxu0  ;;  %v1385_v49 = vadd.f32 %v1384_v3, %v1338_v14  ;;  %v1496_v25 = vsel %vm1483_vm7, %v1495_v19, 0.0  ;;  %v1348_v19 = vmul.f32 %v3497_v42, %v3497_v42 }
 0x36c   :  { %v3519_v5 = vsel %vm1483_vm7, %v2091_v62, 0.0  ;;  %v1574_v8 = vpop.f32.mrf.mxu1 }
 0x36d   :  { %v3521_v9 = vpop.f32.mrf.mxu0  ;;  %v1386_v4 = vadd.f32 %v1385_v49, %v1339_v58  ;;  %v1589_v10 = vmul.f32 %v1574_v8, %v1574_v8  ;;  %v3526_v15 = vsel %vm1483_vm7, %v1574_v8, 0.0 }
 0x36e   :  { %v2185_v12 = vmul.f32 %v3521_v9, %v3521_v9  ;;  %v2839_v24 = vpop.f32.mrf.mxu1 }
 0x36f   :  { %1497 = vadd.xlane.f32.xlu0 %v1496_v25  ;;  %v2854_v13 = vpop.f32.mrf.mxu0  ;;  %v1387_v17 = vadd.f32 %v1386_v4, %v1340_v2  ;;  %v1590_v18 = vsel %vm1483_vm7, %v1589_v10, 0.0  ;;  %v1349_v4 = vmul.f32 %v3501_v44, %v3501_v44  ;;  %v1351_v44 = vmul.f32 %v3511_v55, %v3511_v55 }
 0x370   :  { %v3530_v21 = vsel %vm1483_vm7, %v2185_v12, 0.0  ;;  %v1668_v28 = vpop.f32.mrf.mxu1  ;;  %v1350_v13 = vmul.f32 %v3503_v7, %v3503_v7  ;;  %v1352_v7 = vmul.f32 %v3505_v50, %v3505_v50  ;;  %v1353_v55 = vmul.f32 %v3509_v54, %v3509_v54 }
 0x371   :  { %v2859_v29 = vpop.f32.mrf.mxu0  ;;  %v1388_v30 = vadd.f32 %v1387_v17, %v1341_v11  ;;  %v1683_v26 = vmul.f32 %v1668_v28, %v1668_v28  ;;  %v3533_v33 = vsel %vm1483_vm7, %v1668_v28, 0.0  ;;  %v1354_v50 = vmul.f32 %v3507_v51, %v3507_v51 }
 0x372   :  { %v2423_v32 = vmul.f32 %v2859_v29, %v2859_v29  ;;  %v2844_v34 = vpop.f32.mrf.mxu1 }
 0x373   :  { %1591 = vadd.xlane.f32.xlu0 %v1590_v18  ;;  %v2343_v35 = vpop.f32.mrf.mxu0  ;;  %v1389_v57 = vadd.f32 %v1388_v30, %v1342_v16  ;;  %v1684_v37 = vsel %vm1483_vm7, %v1683_v26, 0.0 }
 0x374   :  { %v2422_v38 = vmul.f32 %v2343_v35, %v2343_v35  ;;  %v1841_v40 = vpop.f32.mrf.mxu1 }
 0x375   :  { %v2862_v27 = vpop.f32.mrf.mxu0  ;;  %v1390_v41 = vadd.f32 %v1389_v57, %v1343_v22  ;;  %v1936_v43 = vmul.f32 %v1841_v40, %v1841_v40 }
 0x376   :  { %v2438_v46 = vadd.f32 %v2423_v32, %v2422_v38  ;;  %v1843_v47 = vpop.f32.mrf.mxu1  ;;  %v2425_v58 = vmul.f32 %v2862_v27, %v2862_v27 }
 0x377   :  { %1685 = vadd.xlane.f32.xlu0 %v1684_v37  ;;  %v2353_v48 = vpop.f32.mrf.mxu0  ;;  %v1391_v20 = vadd.f32 %v1390_v41, %v1344_v31  ;;  %v1937_v53 = vmul.f32 %v1843_v47, %v1843_v47 }
 0x378   :  { %v2424_v56 = vmul.f32 %v2353_v48, %v2353_v48  ;;  %v1847_v14 = vpop.f32.mrf.mxu1 }
 0x379   :  { %v2865_v59 = vpop.f32.mrf.mxu0  ;;  %v1392_v61 = vadd.f32 %v1391_v20, %v1345_v6  ;;  %v1968_v3 = vadd.f32 %v1937_v53, %v1936_v43  ;;  %v1938_v45 = vmul.f32 %v1847_v14, %v1847_v14 }
 0x37a   :  { %v2439_v62 = vadd.f32 %v2438_v46, %v2424_v56  ;;  %v1849_v63 = vpop.f32.mrf.mxu1  ;;  %v2427_v8 = vmul.f32 %v2865_v59, %v2865_v59 }
 0x37b   :  { %v2363_v0 = vpop.f32.mrf.mxu0  ;;  %v1393_v23 = vadd.f32 %v1392_v61, %v1346_v52  ;;  %v1969_v49 = vadd.f32 %v1968_v3, %v1938_v45  ;;  %v1939_v39 = vmul.f32 %v1849_v63, %v1849_v63 }
 0x37c   :  { %v2426_v2 = vmul.f32 %v2363_v0, %v2363_v0  ;;  %v1853_v25 = vpop.f32.mrf.mxu1  ;;  %v2440_v11 = vadd.f32 %v2439_v62, %v2425_v58 }
 0x37d   :  { %v2868_v60 = vpop.f32.mrf.mxu0  ;;  %v1394_v10 = vadd.f32 %v1393_v23, %v1347_v36  ;;  %v1970_v12 = vadd.f32 %v1969_v49, %v1939_v39  ;;  %v1940_v24 = vmul.f32 %v1853_v25, %v1853_v25 }
 0x37e   :  { %v1855_v42 = vpop.f32.mrf.mxu1  ;;  %v2441_v16 = vadd.f32 %v2440_v11, %v2426_v2  ;;  %v2429_v26 = vmul.f32 %v2868_v60, %v2868_v60 }
 0x37f   :  { %v2373_v17 = vpop.f32.mrf.mxu0  ;;  %v1395_v18 = vadd.f32 %v1394_v10, %v1348_v19  ;;  %v1971_v22 = vadd.f32 %v1970_v12, %v1940_v24  ;;  %v1941_v28 = vmul.f32 %v1855_v42, %v1855_v42 }
 0x380   :  { %v2428_v29 = vmul.f32 %v2373_v17, %v2373_v17  ;;  %v1859_v30 = vpop.f32.mrf.mxu1  ;;  %v2442_v32 = vadd.f32 %v2441_v16, %v2427_v8  ;;  %v2174_v16 = vsel %vm1483_vm7, %v3521_v9, 0.0 }
 0x381   :  { %v2871_v34 = vpop.f32.mrf.mxu0  ;;  %v1396_v35 = vadd.f32 %v1395_v18, %v1349_v4  ;;  %v1972_v57 = vadd.f32 %v1971_v22, %v1941_v28  ;;  %v1942_v31 = vmul.f32 %v1859_v30, %v1859_v30 }
 0x382   :  { %v1861_v37 = vpop.f32.mrf.mxu1  ;;  %v2443_v38 = vadd.f32 %v2442_v32, %v2428_v29  ;;  %v2431_v47 = vmul.f32 %v2871_v34, %v2871_v34 }
 0x383   :  { %v2383_v40 = vpop.f32.mrf.mxu0  ;;  %v1397_v27 = vadd.f32 %v1396_v35, %v1350_v13  ;;  %v1973_v41 = vadd.f32 %v1972_v57, %v1942_v31  ;;  %v1943_v6 = vmul.f32 %v1861_v37, %v1861_v37 }
 0x384   :  { %v2430_v43 = vmul.f32 %v2383_v40, %v2383_v40  ;;  %v1865_v46 = vpop.f32.mrf.mxu1  ;;  %v2444_v48 = vadd.f32 %v2443_v38, %v2429_v26 }
 0x385   :  { %v2874_v20 = vpop.f32.mrf.mxu0  ;;  %v1398_v52 = vadd.f32 %v1397_v27, %v1351_v44  ;;  %v1974_v53 = vadd.f32 %v1973_v41, %v1943_v6  ;;  %v1944_v56 = vmul.f32 %v1865_v46, %v1865_v46 }
 0x386   :  { %v1867_v36 = vpop.f32.mrf.mxu1  ;;  %v2445_v14 = vadd.f32 %v2444_v48, %v2430_v43  ;;  %v2433_v19 = vmul.f32 %v2874_v20, %v2874_v20 }
 0x387   :  { %v2393_v58 = vpop.f32.mrf.mxu0  ;;  %v1399_v59 = vadd.f32 %v1398_v52, %v1352_v7  ;;  %v1975_v61 = vadd.f32 %v1974_v53, %v1944_v56  ;;  %v1945_v3 = vmul.f32 %v1867_v36, %v1867_v36 }
 0x388   :  { %v2432_v45 = vmul.f32 %v2393_v58, %v2393_v58  ;;  %v1871_v62 = vpop.f32.mrf.mxu1  ;;  %v2446_v63 = vadd.f32 %v2445_v14, %v2431_v47 }
 0x389   :  { %v2877_v0 = vpop.f32.mrf.mxu0  ;;  %v1400_v23 = vadd.f32 %v1399_v59, %v1353_v55  ;;  %v1976_v49 = vadd.f32 %v1975_v61, %v1945_v3  ;;  %v1946_v54 = vmul.f32 %v1871_v62, %v1871_v62 }
 0x38a   :  { %v1873_v39 = vpop.f32.mrf.mxu1  ;;  %v2447_v2 = vadd.f32 %v2446_v63, %v2432_v45  ;;  %v2435_v51 = vmul.f32 %v2877_v0, %v2877_v0  ;;  %v130_v45 = vpop.xlane.xlu0 %129 }
 0x38b   :  { %v2403_v25 = vpop.f32.mrf.mxu0  ;;  %v1401_v8 = vadd.f32 %v1400_v23, %v1354_v50  ;;  %v1977_v10 = vadd.f32 %v1976_v49, %v1946_v54  ;;  %v1947_v12 = vmul.f32 %v1873_v39, %v1873_v39 }
 0x38c   :  { %v2434_v11 = vmul.f32 %v2403_v25, %v2403_v25  ;;  %v2448_v60 = vadd.f32 %v2447_v2, %v2433_v19  ;;  %v1877_v24 = vpop.f32.mrf.mxu1 }
 0x38d   :  { %v2880_v4 = vpop.f32.mrf.mxu0  ;;  %1402 = vadd.xlane.f32.xlu0 %v1401_v8  ;;  %v1978_v29 = vadd.f32 %v1977_v10, %v1947_v12  ;;  %v1948_v30 = vmul.f32 %v1877_v24, %v1877_v24 }
 0x38e   :  { %v2449_v13 = vadd.f32 %v2448_v60, %v2434_v11  ;;  %v2437_v18 = vmul.f32 %v2880_v4, %v2880_v4  ;;  %v1879_v32 = vpop.f32.mrf.mxu1 }
 0x38f   :  { %v2413_v42 = vpop.f32.mrf.mxu0  ;;  %v1979_v31 = vadd.f32 %v1978_v29, %v1948_v30  ;;  %v1949_v7 = vmul.f32 %v1879_v32, %v1879_v32 }
 0x390   :  { %v2436_v17 = vmul.f32 %v2413_v42, %v2413_v42  ;;  %v2450_v22 = vadd.f32 %v2449_v13, %v2435_v51  ;;  %v1883_v37 = vpop.f32.mrf.mxu1 }
 0x391   :  { %v2530_v28 = vpop.f32.mrf.mxu0  ;;  %2175 = vadd.xlane.f32.xlu0 %v2174_v16  ;;  %v1980_v38 = vadd.f32 %v1979_v31, %v1949_v7  ;;  %v1950_v40 = vmul.f32 %v1883_v37, %v1883_v37 }
 0x392   :  { %v3559_v26 = vsel %vm1483_vm7, %v2530_v28, 0.0  ;;  %v2451_v34 = vadd.f32 %v2450_v22, %v2436_v17  ;;  %v2545_v35 = vmul.f32 %v2530_v28, %v2530_v28  ;;  %v1885_v27 = vpop.f32.mrf.mxu1 }
 0x393   :  { %v2885_v44 = vpop.f32.mrf.mxu0  ;;  %v1981_v41 = vadd.f32 %v1980_v38, %v1950_v40  ;;  %v1951_v6 = vmul.f32 %v1885_v27, %v1885_v27 }
 0x394   :  { %v2452_v57 = vadd.f32 %v2451_v34, %v2437_v18  ;;  %v2546_v9 = vsel %vm1483_vm7, %v2545_v35, 0.0  ;;  %v1889_v43 = vpop.f32.mrf.mxu1 }
 0x395   :  { %v1982_v46 = vadd.f32 %v1981_v41, %v1951_v6  ;;  %v1952_v47 = vmul.f32 %v1889_v43, %v1889_v43 }
 0x396   :  { %2453 = vadd.xlane.f32.xlu0 %v2452_v57  ;;  %v1891_v48 = vpop.f32.mrf.mxu1 }
 0x397   :  { %v1983_v20 = vadd.f32 %v1982_v46, %v1952_v47  ;;  %v1953_v55 = vmul.f32 %v1891_v48, %v1891_v48 }
 0x398   :  { %v1895_v52 = vpop.f32.mrf.mxu1 }
 0x399   :  { %v1984_v53 = vadd.f32 %v1983_v20, %v1953_v55  ;;  %v1954_v56 = vmul.f32 %v1895_v52, %v1895_v52 }
 0x39a   :  { %2547 = vadd.xlane.f32.xlu0 %v2546_v9  ;;  %v1897_v50 = vpop.f32.mrf.mxu1 }
 0x39b   :  { %v1985_v36 = vadd.f32 %v1984_v53, %v1954_v56  ;;  %v1955_v14 = vmul.f32 %v1897_v50, %v1897_v50 }
 0x39c   :  { %v1901_v58 = vpop.f32.mrf.mxu1 }
 0x39d   :  { %v1986_v59 = vadd.f32 %v1985_v36, %v1955_v14  ;;  %v1956_v61 = vmul.f32 %v1901_v58, %v1901_v58 }
 0x39e   :  { %v1903_v3 = vpop.f32.mrf.mxu1 }
 0x39f   :  { %v1987_v62 = vadd.f32 %v1986_v59, %v1956_v61  ;;  %v1957_v19 = vmul.f32 %v1903_v3, %v1903_v3 }
 0x3a0   :  { %v1907_v0 = vpop.f32.mrf.mxu1 }
 0x3a1   :  { %v1988_v23 = vadd.f32 %v1987_v62, %v1957_v19  ;;  %v1958_v49 = vmul.f32 %v1907_v0, %v1907_v0 }
 0x3a2   :  { %v1909_v54 = vpop.f32.mrf.mxu1 }
 0x3a3   :  { %v1989_v39 = vadd.f32 %v1988_v23, %v1958_v49  ;;  %v1959_v2 = vmul.f32 %v1909_v54, %v1909_v54 }
 0x3a4   :  { %v1913_v25 = vpop.f32.mrf.mxu1 }
 0x3a5   :  { %v1990_v8 = vadd.f32 %v1989_v39, %v1959_v2  ;;  %v1960_v11 = vmul.f32 %v1913_v25, %v1913_v25 }
 0x3a6   :  { %v1915_v51 = vpop.f32.mrf.mxu1 }
 0x3a7   :  { %v1991_v24 = vadd.f32 %v1990_v8, %v1960_v11  ;;  %v1961_v13 = vmul.f32 %v1915_v51, %v1915_v51 }
 0x3a8   :  { %v1919_v17 = vpop.f32.mrf.mxu1 }
 0x3a9   :  { %v1992_v22 = vadd.f32 %v1991_v24, %v1961_v13  ;;  %v1962_v28 = vmul.f32 %v1919_v17, %v1919_v17 }
 0x3aa   :  { %v1921_v30 = vpop.f32.mrf.mxu1 }
 0x3ab   :  { %v1993_v32 = vadd.f32 %v1992_v22, %v1962_v28  ;;  %v1963_v34 = vmul.f32 %v1921_v30, %v1921_v30 }
 0x3ac   :  { %v1925_v44 = vpop.f32.mrf.mxu1 }
 0x3ad   :  { %v1994_v35 = vadd.f32 %v1993_v32, %v1963_v34  ;;  %v1964_v57 = vmul.f32 %v1925_v44, %v1925_v44 }
 0x3ae   :  { %v1927_v31 = vpop.f32.mrf.mxu1 }
 0x3af   :  { %v1995_v7 = vadd.f32 %v1994_v35, %v1964_v57  ;;  %v1965_v37 = vmul.f32 %v1927_v31, %v1927_v31 }
 0x3b0   :  { %v1931_v9 = vpop.f32.mrf.mxu1 }
 0x3b1   :  { %v1996_v38 = vadd.f32 %v1995_v7, %v1965_v37  ;;  %v1966_v40 = vmul.f32 %v1931_v9, %v1931_v9 }
 0x3b2   :  { %v1933_v27 = vpop.f32.mrf.mxu1 }
 0x3b3   :  { %v1997_v41 = vadd.f32 %v1996_v38, %v1966_v40  ;;  %v1967_v6 = vmul.f32 %v1933_v27, %v1933_v27 }
 0x3b6   :  { %v128_v63 = vpop.xlane.xlu1 %127 }
 0x3b7   :  { %2959 = vrcp.f32 %v128_v63 }
 0x3b8   :  { %2961 = vrcp.f32 %v130_v45 }
 0x3c4   :  { %v2960_v60 = vpop.eup %2959 }
 0x3c5   :  { %v2962_v4 = vpop.eup %2961  ;;  %v185_v10 = vpop.xlane.xlu0 %184 }
 0x3c6   :  { %v179_v12 = vpop.xlane.xlu1 %178  ;;  %v186_v42 = vmul.f32 %v2962_v4, %v185_v10 }
 0x3c7   :  { %v180_v16 = vmul.f32 %v2960_v60, %v179_v12 }
 0x3c9   :  { %v187_v18 = vadd.f32 %v186_v42, %v180_v16 }
 0x3cb   :  { %v189_v29 = vsel %vm188_vm8, %v187_v18, 0.0 }
 0x3cc   :  { %190 = vadd.xlane.f32.xlu1 %v189_v29 }
 0x3d0   :  { %1485 = vadd.xlane.f32.xlu1 %v3515_v1  ;;  %v1998_v1 = vadd.f32 %v1997_v41, %v1967_v6 }
 0x3d4   :  { %2093 = vadd.xlane.f32.xlu1 %v3519_v5 }
 0x3d8   :  { %1579 = vadd.xlane.f32.xlu1 %v3526_v15 }
 0x3dc   :  { %1673 = vadd.xlane.f32.xlu1 %v3533_v33 }
 0x3e0   :  { %2187 = vadd.xlane.f32.xlu1 %v3530_v21 }
 0x3e4   :  { %1999 = vadd.xlane.f32.xlu1 %v1998_v1 }
 0x3e8   :  { %2535 = vadd.xlane.f32.xlu1 %v3559_v26 }
 0x3f4   :  { %v3568_v43 = vpop.xlane.xlu0 %2081 }
 0x3f8   :  { %v1498_v5 = vpop.xlane.xlu0 %1497 }
 0x3fc   :  { %v1592_v46 = vpop.xlane.xlu0 %1591 }
 0x400   :  { %v1686_v15 = vpop.xlane.xlu0 %1685 }
 0x401   :  { %3066 = shalt.err (!%p3063_p1)
}
 0x402   :  { %2594 = dma.vmem_to_hbm [thread:$0]  %s2592_s27, 16, %s3588_s7, [#allocation4]   ;;  %v1499_v26 = vrot.slane %v1498_v5, 4  ;;  %v1593_v50 = vrot.slane %v1592_v46, 4  ;;  %v1687_v62 = vrot.slane %v1686_v15, 4  ;;  %v2083_v42 = vrot.slane %v3568_v43, 4 }
 0x403   :  { %s3116_s10 = smov [#allocation13]  }
 0x404   :  { %v1500_v48 = vadd.f32 %v1499_v26, %v1498_v5  ;;  %v1594_v45 = vadd.f32 %v1593_v50, %v1592_v46  ;;  %v1688_v8 = vadd.f32 %v1687_v62, %v1686_v15  ;;  %v2084_v57 = vadd.f32 %v2083_v42, %v3568_v43 }
 0x406   :  { %v1501_v56 = vrot.slane %v1500_v48, 2  ;;  %v1595_v25 = vrot.slane %v1594_v45, 2  ;;  %v1689_v16 = vrot.slane %v1688_v8, 2 }
 0x408   :  { %v1502_v0 = vadd.f32 %v1501_v56, %v1500_v48  ;;  %v1596_v22 = vadd.f32 %v1595_v25, %v1594_v45  ;;  %v1690_v9 = vadd.f32 %v1689_v16, %v1688_v8 }
 0x40a   :  { %v1503_v60 = vrot.slane %v1502_v0, 1  ;;  %v1597_v37 = vrot.slane %v1596_v22, 1  ;;  %v1691_v48 = vrot.slane %v1690_v9, 1 }
 0x40c   :  { %v1504_v18 = vadd.f32 %v1503_v60, %v1502_v0 }
 0x416   :  { %v1403_v21 = vpop.xlane.xlu0 %1402 }
 0x417   :  { %v1404_v33 = vrot.slane %v1403_v21, 4 }
 0x419   :  { %v1405_v47 = vadd.f32 %v1404_v33, %v1403_v21  ;;  %v2085_v21 = vrot.slane %v2084_v57, 2 }
 0x41a   :  { %v2176_v54 = vpop.xlane.xlu0 %2175 }
 0x41b   :  { %v1406_v20 = vrot.slane %v1405_v47, 2  ;;  %v2177_v32 = vrot.slane %v2176_v54, 4 }
 0x41d   :  { %v1407_v14 = vadd.f32 %v1406_v20, %v1405_v47  ;;  %v2178_v6 = vadd.f32 %v2177_v32, %v2176_v54  ;;  %v1598_v47 = vadd.f32 %v1597_v37, %v1596_v22 }
 0x41f   :  { %v1408_v63 = vrot.slane %v1407_v14, 1  ;;  %v2454_v12 = vpop.xlane.xlu0 %2453 }
 0x420   :  { %v2455_v31 = vrot.slane %v2454_v12, 4 }
 0x421   :  { %v1409_v51 = vadd.f32 %v1408_v63, %v1407_v14 }
 0x422   :  { %v2456_v33 = vadd.f32 %v2455_v31, %v2454_v12 }
 0x423   :  { %v2548_v35 = vpop.xlane.xlu0 %2547 }
 0x424   :  { %v2549_v1 = vrot.slane %v2548_v35, 4  ;;  %v2457_v14 = vrot.slane %v2456_v33, 2 }
 0x455   :  { %v191_v55 = vpop.xlane.xlu1 %190 }
 0x456   :  { %v192_v52 = vrot.slane %v191_v55, 4 }
 0x458   :  { %v193_v53 = vadd.f32 %v192_v52, %v191_v55  ;;  %v2179_v52 = vrot.slane %v2178_v6, 2 }
 0x459   :  { %v1486_v36 = vpop.xlane.xlu1 %1485 }
 0x45a   :  { %v194_v58 = vrot.slane %v193_v53, 2  ;;  %v1487_v59 = vrot.slane %v1486_v36, 4  ;;  %v2180_v63 = vadd.f32 %v2179_v52, %v2178_v6 }
 0x45c   :  { %v1488_v61 = vadd.f32 %v1487_v59, %v1486_v36  ;;  %v195_v3 = vadd.f32 %v194_v58, %v193_v53  ;;  %v2550_v53 = vadd.f32 %v2549_v1, %v2548_v35  ;;  %v1692_v59 = vadd.f32 %v1691_v48, %v1690_v9 }
 0x45d   :  { %v2094_v19 = vpop.xlane.xlu1 %2093 }
 0x45e   :  { %v1489_v23 = vrot.slane %v1488_v61, 2  ;;  %v196_v49 = vrot.slane %v195_v3, 1  ;;  %v2095_v28 = vrot.slane %v2094_v19, 4 }
 0x460   :  { %v197_v39 = vadd.f32 %v196_v49, %v195_v3  ;;  %v1490_v2 = vadd.f32 %v1489_v23, %v1488_v61  ;;  %v2096_v38 = vadd.f32 %v2095_v28, %v2094_v19  ;;  %v2086_v61 = vadd.f32 %v2085_v21, %v2084_v57 }
 0x461   :  { %v1580_v11 = vpop.xlane.xlu1 %1579  ;;  %v2551_v19 = vrot.slane %v2550_v53, 2 }
 0x462   :  { %v1581_v4 = vrot.slane %v1580_v11, 4  ;;  %2886 = vpush %v197_v39  ;;  %v1491_v10 = vrot.slane %v1490_v2, 1  ;;  %v2097_v20 = vrot.slane %v2096_v38, 2  ;;  %v2087_v54 = vrot.slane %v2086_v61, 1 }
 0x463   :  { %2888 = vpush %v1409_v51  ;;  %v2458_v39 = vadd.f32 %v2457_v14, %v2456_v33  ;;  %v2181_v51 = vrot.slane %v2180_v63, 1 }
 0x464   :  { %v1582_v24 = vadd.f32 %v1581_v4, %v1580_v11  ;;  %v1492_v13 = vadd.f32 %v1491_v10, %v1490_v2  ;;  %v2098_v62 = vadd.f32 %v2097_v20, %v2096_v38  ;;  %v2552_v11 = vadd.f32 %v2551_v19, %v2550_v53 }
 0x465   :  { %v1674_v17 = vpop.xlane.xlu1 %1673  ;;  %v2088_v12 = vadd.f32 %v2087_v54, %v2086_v61  ;;  %v2182_v16 = vadd.f32 %v2181_v51, %v2180_v63 }
 0x466   :  { %v1583_v29 = vrot.slane %v1582_v24, 2  ;;  %v1675_v30 = vrot.slane %v1674_v17, 4  ;;  %2890 = vpush %v1492_v13  ;;  %v2099_v8 = vrot.slane %v2098_v62, 1 }
 0x467   :  { %2892 = vpush %v1504_v18 }
 0x468   :  { %v1676_v34 = vadd.f32 %v1675_v30, %v1674_v17  ;;  %v1584_v44 = vadd.f32 %v1583_v29, %v1582_v24  ;;  %v2459_v24 = vrot.slane %v2458_v39, 1  ;;  %v2100_v13 = vadd.f32 %v2099_v8, %v2098_v62 }
 0x469   :  { %v2188_v7 = vpop.xlane.xlu1 %2187  ;;  %v2553_v17 = vrot.slane %v2552_v11, 1 }
 0x46a   :  { %v1677_v40 = vrot.slane %v1676_v34, 2  ;;  %v2189_v27 = vrot.slane %v2188_v7, 4  ;;  %v1585_v41 = vrot.slane %v1584_v44, 1  ;;  %v2460_v28 = vadd.f32 %v2459_v24, %v2458_v39 }
 0x46b   :  { %v2554_v29 = vadd.f32 %v2553_v17, %v2552_v11 }
 0x46c   :  { %v2190_v5 = vadd.f32 %v2189_v27, %v2188_v7  ;;  %v1586_v46 = vadd.f32 %v1585_v41, %v1584_v44  ;;  %v1678_v15 = vadd.f32 %v1677_v40, %v1676_v34 }
 0x46d   :  { %v2000_v26 = vpop.xlane.xlu1 %1999 }
 0x46e   :  { %v2001_v43 = vrot.slane %v2000_v26, 4  ;;  %2894 = vpush %v1586_v46  ;;  %v1679_v55 = vrot.slane %v1678_v15, 1  ;;  %v2191_v56 = vrot.slane %v2190_v5, 2 }
 0x46f   :  { %2896 = vpush %v1598_v47 }
 0x470   :  { %v2002_v50 = vadd.f32 %v2001_v43, %v2000_v26  ;;  %v1680_v36 = vadd.f32 %v1679_v55, %v1678_v15  ;;  %v2192_v49 = vadd.f32 %v2191_v56, %v2190_v5 }
 0x471   :  { %v2536_v58 = vpop.xlane.xlu1 %2535 }
 0x472   :  { %v2003_v3 = vrot.slane %v2002_v50, 2  ;;  %v2537_v45 = vrot.slane %v2536_v58, 4  ;;  %2898 = vpush %v1680_v36  ;;  %v2193_v10 = vrot.slane %v2192_v49, 1 }
 0x473   :  { %2900 = vpush %v1692_v59 }
 0x474   :  { %v2538_v0 = vadd.f32 %v2537_v45, %v2536_v58  ;;  %v2004_v23 = vadd.f32 %v2003_v3, %v2002_v50  ;;  %v2194_v18 = vadd.f32 %v2193_v10, %v2192_v49 }
 0x476   :  { %v2539_v2 = vrot.slane %v2538_v0, 2  ;;  %v2005_v25 = vrot.slane %v2004_v23, 1 }
 0x478   :  { %v2540_v60 = vadd.f32 %v2539_v2, %v2538_v0  ;;  %v2006_v4 = vadd.f32 %v2005_v25, %v2004_v23 }
 0x47a   :  { %2902 = vpush %v2006_v4  ;;  %v2541_v42 = vrot.slane %v2540_v60, 1 }
 0x47b   :  { %2904 = vpush %v2088_v12 }
 0x47c   :  { %2906 = vpush %v2100_v13  ;;  %v2542_v22 = vadd.f32 %v2541_v42, %v2540_v60 }
 0x47d   :  { %2908 = vpush %v2182_v16 }
 0x47e   :  { %2910 = vpush %v2194_v18 }
 0x47f   :  { %2912 = vpush %v2460_v28 }
 0x480   :  { %2914 = vpush %v2542_v22 }
 0x481   :  { %2916 = vpush %v2554_v29 }
 0x493   :  { %s2887_s7 = spop %2886 }
 0x494   :  { %s201_s9 = smul.f32 0.020833334, %s2887_s7  ;;  %s2889_s12 = spop %2888 }
 0x496   :  { %203 = sst [smem:[#allocation13]] %s201_s9 }
 0x497   :  { %2576 = dma.smem_to_hbm %s3116_s10, 16, %s3586_s5, [#allocation5]  }
 0x498   :  { %s2891_s13 = spop %2890 }
 0x499   :  { %s2893_s14 = spop %2892 }
 0x49f   :  { %s2895_s15 = spop %2894 }
 0x4a0   :  { %s2897_s16 = spop %2896  ;;  %s1588_s17 = sadd.f32 %s2895_s15, %s2891_s13 }
 0x4a1   :  { %s1600_s19 = sadd.f32 %s2897_s16, %s2893_s14 }
 0x4a3   :  { %s2899_s2 = spop %2898 }
 0x4a4   :  { %s2901_s18 = spop %2900  ;;  %s1682_s20 = sadd.f32 %s2899_s2, %s1588_s17 }
 0x4a5   :  { %s1694_s21 = sadd.f32 %s2901_s18, %s1600_s19  ;;  %s3117_s2 = smov [#allocation14]  }
 0x4ab   :  { %s2903_s22 = spop %2902 }
 0x4ac   :  { %s2008_s23 = sadd.f32 %s2903_s22, %s2889_s12  ;;  %s2905_s24 = spop %2904 }
 0x4ad   :  { %s2090_s1 = sadd.f32 %s2905_s24, %s1682_s20  ;;  %s2907_s25 = spop %2906 }
 0x4ae   :  { %s2102_s3 = sadd.f32 %s2907_s25, %s1694_s21  ;;  %s2909_s4 = spop %2908 }
 0x4af   :  { %s2184_s26 = sadd.f32 %s2909_s4, %s2090_s1  ;;  %s2911_s5 = spop %2910 }
 0x4b0   :  { %s2196_s27 = sadd.f32 %s2911_s5, %s2102_s3  ;;  %s2913_s28 = spop %2912 }
 0x4b1   :  { %s2462_s29 = sadd.f32 %s2913_s28, %s2008_s23  ;;  %s2915_s30 = spop %2914 }
 0x4b2   :  { %s2544_s8 = sadd.f32 %s2915_s30, %s2184_s26  ;;  %s2917_s7 = spop %2916 }
 0x4b3   :  { %s2556_s9 = sadd.f32 %s2917_s7, %s2196_s27 }
 0x4b4   :  { %s2557_s10 = smul.f32 2.0, %s2544_s8 }
 0x4b5   :  { %s2560_s0 = ssub.f32 %s2462_s29, %s2556_s9 }
 0x4b6   :  { %s2558_s11 = ssub.f32 %s2556_s9, %s2557_s10 }
 0x4b7   :  { %s2561_s14 = smul.f32 0.005, %s2560_s0 }
 0x4b8   :  { %s2559_s13 = sadd.f32 384.0, %s2558_s11 }
 0x4ba   :  { %s2562_s12 = sadd.f32 %s2561_s14, %s2559_s13 }
 0x4bc   :  { %s2563_s15 = smul.f32 2.0, %s2562_s12 }
 0x4be   :  { %s2566_s16 = smul.f32 0.083333336, %s2563_s15 }
 0x4c0   :  { %2568 = sst [smem:[#allocation14]] %s2566_s16 }
 0x4c1   :  { %2584 = dma.smem_to_hbm %s3117_s2, 16, %s3587_s6, [#allocation15]  }
 0x4c2   :  { %3099 = dma.done.wait [#allocation5], 16  }
 0x4c3   :  { %3100 = vsyncadd [#allocation5], 4294967280 }
 0x4c4   :  { %3101 = dma.done.wait [#allocation15], 16  }
 0x4c5   :  { %3102 = vsyncadd [#allocation15], 4294967280 }
 0x4c6   :  { %3103 = dma.done.wait [#allocation4], 16  }
 0x4c7   :  { %3104 = vsyncadd [#allocation4], 4294967280 }
 0x4c8   :  { %2604 = sfence }
 0x4c9   :  { %2605 = vsyncpa [#allocation3], 1 }
 0x4ca   :  { %2606 = vsyncpa [#allocation9], 1 }
 0x4cb   :  { %2607 = vsyncpa [#allocation12], 1 }
 0x4cc   :  { %2608 = vsyncpa [#allocation4], 1 }
 0x4cd   :  { %2609 = vsyncpa [#allocation5], 1 }
 0x4ce   :  { %2610 = vsyncpa [#allocation15], 1 }
 0x4cf   :  { %2611 = vsyncpa [#allocation6], 1 }

</bundles_post_ra>
